<compile_context>
chip_gen: v6e
topology: v6e:2x2x1
jax: 0.10.0
libtpu: 0.0.40
codegen_flags: <defaults>
</compile_context>

<pallas_src>
import jax
import jax.numpy as jnp
import numpy as np
from jax.experimental import pallas as pl
from jax.experimental.pallas import tpu as pltpu


def _filter_kernel(u_ref, k_ref, K_ref, A_ref, ez_ref, ew_ref,
                   Qd_ref, Q0_ref, m0_ref, WdT_ref, bd_ref,
                   zf_ref, mf_ref, kl_ref,
                   z_carry):
    tt = pl.program_id(1)                       # time-block index (sequential / "arbitrary")
    tT, tb, S, L = ez_ref.shape

    Qd = Qd_ref[0, :]                           # (L,)  process-noise diag
    Q0 = Q0_ref[0, :]                           # (L,)  initial-condition diag
    m0 = m0_ref[0, :]                           # (L,)
    WdT = WdT_ref[...]                          # (L, L)
    bd = bd_ref[0, :]                           # (L,)

    # reset the recursion carry at the start of each trial-block's time series
    @pl.when(tt == 0)
    def _():
        z_carry[...] = jnp.zeros_like(z_carry)

    z_prev = z_carry[...]                       # (tb, S, L), carried in registers below

    # fully-unrolled inner time loop (tT is small and static)
    for i in range(tT):
        u_t = u_ref[i]                          # (tb, L)  zero-padded input
        k_t = k_ref[i]                          # (tb, L)
        K_t = K_ref[i]                          # (tb, L, R)
        A_t = A_ref[i]                          # (tb, L, R) = K (I + K^T diag(Q) K)^-1
        ez = ez_ref[i]                          # (tb, S, L)
        ew = ew_ref[i]                          # (tb, S, R)

        # ---- prediction mean (dynamics path computed every step; z_prev is zeros at t==0) --
        h = jnp.tanh(jnp.dot(z_prev.reshape(tb * S, L), WdT,
                             preferred_element_type=jnp.float32) + bd)
        m_dyn = h.reshape(tb, S, L) + u_t[:, None, :]
        if i == 0:                              # only the first inner step can be t_global==0
            is_first = tt == 0
            m_first = jnp.broadcast_to((m0[None, :] + u_t)[:, None, :], (tb, S, L))
            m_pred = jnp.where(is_first, m_first, m_dyn)
            Qg = jnp.where(is_first, Q0, Qd)
        else:
            m_pred = m_dyn
            Qg = Qd

        # ---- filtering update: the two rank-R corrections fused into one einsum pair -------
        z_p = jnp.sqrt(Qg)[None, None, :] * ez                       # prior-noise sample
        a = m_pred + (Qd * k_t)[:, None, :]                          # (tb, S, L)
        az = jnp.concatenate([a, z_p], axis=1)                       # (tb, 2S, L)
        v = jnp.einsum('bsl,blr->bsr', az, K_t,
                       preferred_element_type=jnp.float32)           # K^T [a ; z_p]
        v = v + jnp.concatenate([jnp.zeros_like(ew), ew], axis=1)    # add w_t to the z_p half
        corr = jnp.einsum('bsr,blr->bsl', v, A_t,
                          preferred_element_type=jnp.float32)        # (tb, 2S, L)

        g = k_t[:, None, :] - corr[:, :S, :]
        m_f = m_pred + Qg[None, None, :] * g
        z_f = m_f + z_p - corr[:, S:, :]

        # KL: dynamic quadratic part only (static trace/logdet added in the wrapper)
        qp = jnp.sum(Qg[None, None, :] * g * g, axis=-1)             # (tb, S)

        zf_ref[i] = z_f
        mf_ref[i] = jnp.mean(m_f, axis=1)
        kl_ref[i] = (0.5 * jnp.mean(qp, axis=1))[:, None]
        z_prev = z_f

    z_carry[...] = z_prev


def _largest_divisor_leq(n, target):
    for c in range(min(n, target), 0, -1):
        if n % c == 0:
            return c
    return 1


def nonlinear_filter_with_input(u, k, K, n_samples, *, Q_diag, Q0_diag, m_init,
                                Wd, bd, u_end_dx, key, time_block=8, trial_block=None):
    """Returns (z_f, stats, eps_z, eps_w) in the torch module's conventions."""
    f32 = jnp.float32
    B, T, L, R = K.shape
    S = n_samples
    tT = _largest_divisor_leq(T, time_block)
    tb = B if trial_block is None else _largest_divisor_leq(B, trial_block)

    # -- static per-(trial,time) precompute (rank x rank solves; sample independent) --------
    Qsel = jnp.concatenate([Q0_diag[None, :],
                            jnp.broadcast_to(Q_diag[None, :], (T - 1, L))], axis=0)   # (T, L)
    M = jnp.einsum('btlr,tl,btls->btrs', K, Qsel, K)               # K^T diag(Q) K  (B,T,R,R)
    IM = jnp.eye(R, dtype=f32) + M
    Lc = jnp.linalg.cholesky(IM)
    Sinv = jnp.linalg.solve(IM, jnp.broadcast_to(jnp.eye(R, dtype=f32), IM.shape))
    A = jnp.einsum('btlr,btrs->btls', K, Sinv)                     # K (I + K^T Q K)^-1
    tr = -jnp.einsum('btrs,btsr->bt', M, Sinv)
    logdet = 2.0 * jnp.sum(jnp.log(jnp.diagonal(Lc, axis1=-2, axis2=-1)), axis=-1)
    kl_static = 0.5 * (tr + logdet)                                # (B, T)

    # -- noise draws (torch.randn equivalents), streamed to the kernel ----------------------
    kz, kw = jax.random.split(key)
    eps_z = jax.random.normal(kz, (T, B, S, L), dtype=f32)
    eps_w = jax.random.normal(kw, (T, B, S, R), dtype=f32)

    # -- time-major kernel inputs ------------------------------------------------------------
    u_pad = jnp.zeros((B, T, L), f32).at[:, :, :u_end_dx].set(u)
    u_tm = jnp.transpose(u_pad, (1, 0, 2))
    k_tm = jnp.transpose(k, (1, 0, 2))
    K_tm = jnp.transpose(K, (1, 0, 2, 3))
    A_tm = jnp.transpose(A, (1, 0, 2, 3))

    Qd2 = Q_diag[None, :].astype(f32)
    Q02 = Q0_diag[None, :].astype(f32)
    m02 = m_init[None, :].astype(f32)
    WdT = Wd.T.astype(f32)
    bd2 = bd[None, :].astype(f32)

    map3 = lambda b, t: (t, b, 0)
    map4 = lambda b, t: (t, b, 0, 0)
    cmap = lambda b, t: (0, 0)

    in_specs = [
        pl.BlockSpec((tT, tb, L), map3),          # u (padded)
        pl.BlockSpec((tT, tb, L), map3),          # k
        pl.BlockSpec((tT, tb, L, R), map4),       # K
        pl.BlockSpec((tT, tb, L, R), map4),       # A
        pl.BlockSpec((tT, tb, S, L), map4),       # eps_z
        pl.BlockSpec((tT, tb, S, R), map4),       # eps_w
        pl.BlockSpec((1, L), cmap),               # Q_diag
        pl.BlockSpec((1, L), cmap),               # Q0_diag
        pl.BlockSpec((1, L), cmap),               # m_init
        pl.BlockSpec((L, L), cmap),               # W_d^T
        pl.BlockSpec((1, L), cmap),               # b_d
    ]
    out_specs = [
        pl.BlockSpec((tT, tb, S, L), map4),       # z_f
        pl.BlockSpec((tT, tb, L), map3),          # m_f (sample mean)
        pl.BlockSpec((tT, tb, 1), map3),          # 0.5 * mean_s(qp)   (dynamic KL part)
    ]
    out_shape = [
        jax.ShapeDtypeStruct((T, B, S, L), f32),
        jax.ShapeDtypeStruct((T, B, L), f32),
        jax.ShapeDtypeStruct((T, B, 1), f32),
    ]

    # VMEM budget: double-buffered in/out blocks + carry scratch, with generous padding slack.
    blk_bytes = 4 * (2 * tT * tb * L + 2 * tT * tb * L * R + tT * tb * S * L
                     + tT * tb * S * R + tT * tb * S * L + tT * tb * L + tT * tb)
    scratch_bytes = 4 * tb * S * L
    vmem_limit = int(min(100 * 2**20, max(32 * 2**20, 4 * (2 * blk_bytes + scratch_bytes))))

    zf, mf, kl_dyn = pl.pallas_call(
        _filter_kernel,
        out_shape=out_shape,
        grid_spec=pltpu.PrefetchScalarGridSpec(
            num_scalar_prefetch=0,
            grid=(B // tb, T // tT),
            in_specs=in_specs,
            out_specs=out_specs,
            scratch_shapes=[pltpu.VMEM((tb, S, L), f32)]),    # z_f[t-1] carry
        compiler_params=pltpu.CompilerParams(
            dimension_semantics=("parallel", "arbitrary"),    # trials parallel, time sequential
            vmem_limit_bytes=vmem_limit),
    )(u_tm, k_tm, K_tm, A_tm, eps_z, eps_w, Qd2, Q02, m02, WdT, bd2)

    # -- back to the torch module's output conventions ---------------------------------------
    z_p_tm = jnp.sqrt(Qsel)[:, None, None, :] * eps_z            # elementwise, done in wrapper
    z_f = jnp.transpose(zf, (2, 1, 0, 3))                        # (S, B, T, L)  (stack dim=2)
    z_p = jnp.transpose(z_p_tm, (2, 1, 0, 3))                    # (S, B, T, L)
    m_f = jnp.transpose(mf, (1, 0, 2))                           # (B, T, L)     (stack dim=1)
    kl = jnp.transpose(kl_dyn[:, :, 0], (1, 0)) + kl_static      # (B, T)
    stats = {'m_f': m_f, 'z_p': z_p, 'kl': kl}
    return z_f, stats, eps_z, eps_w


def reference_forward(u, k, K, n_samples, Q_diag, Q0_diag, m_init, Wd, bd,
                      u_end_dx, eps_z, eps_w):
    """Pure-JAX transliteration of the torch forward, reusing the same noise."""
    B, T, L, R = K.shape
    S = n_samples
    I = jnp.eye(R, dtype=jnp.float32)
    zf_l, zp_l, mf_l, kl_l = [], [], [], []
    z_prev = None
    for t in range(T):
        ez = jnp.transpose(eps_z[t], (1, 0, 2))   # (S, B, L)
        ew = jnp.transpose(eps_w[t], (1, 0, 2))   # (S, B, R)
        Kt, kt = K[:, t], k[:, t]
        if t == 0:
            Qg = Q0_diag
            m_pred = jnp.broadcast_to(m_init[None, :], (B, L)).at[:, :u_end_dx].add(u[:, t])
            IM = I + jnp.einsum('blr,l,bls->brs', Kt, Qg, Kt)
            v = jnp.einsum('blr,bl->br', Kt, m_pred + Q_diag * kt)
            g = kt - jnp.einsum('blr,br->bl', Kt, jnp.linalg.solve(IM, v[..., None])[..., 0])
            m_f = m_pred + Qg * g                                 # (B, L)
            z_p = jnp.sqrt(Qg) * ez
            v2 = jnp.einsum('blr,sbl->sbr', Kt, z_p) + ew
            z_f = m_f[None] + z_p - jnp.einsum(
                'blr,sbr->sbl', Kt, jnp.linalg.solve(IM, v2[..., None])[..., 0])
            qp = jnp.sum(Qg * g * g, axis=-1)                     # (B,)
            tr = -jnp.trace(jnp.linalg.solve(IM, jnp.einsum('blr,l,bls->brs', Kt, Qg, Kt)),
                            axis1=-2, axis2=-1)
            kl_t = 0.5 * (qp + tr + jnp.linalg.slogdet(IM)[1])
            mf_l.append(m_f)
        else:
            Qg = Q_diag
            z2 = z_prev.reshape(S * B, L)
            m_pred = jnp.tanh(z2 @ Wd.T + bd).reshape(S, B, L)
            m_pred = m_pred.at[..., :u_end_dx].add(u[:, t][None])
            IM = I + jnp.einsum('blr,l,bls->brs', Kt, Qg, Kt)
            v = jnp.einsum('blr,sbl->sbr', Kt, m_pred + Q_diag * kt)
            g = kt[None] - jnp.einsum('blr,sbr->sbl', Kt,
                                      jnp.linalg.solve(IM, v[..., None])[..., 0])
            m_f = m_pred + Qg * g
            z_p = jnp.sqrt(Qg) * ez
            v2 = jnp.einsum('blr,sbl->sbr', Kt, z_p) + ew
            z_f = m_f + z_p - jnp.einsum(
                'blr,sbr->sbl', Kt, jnp.linalg.solve(IM, v2[..., None])[..., 0])
            qp = jnp.sum(Qg * g * g, axis=-1)                     # (S, B)
            tr = -jnp.trace(jnp.linalg.solve(IM, jnp.einsum('blr,l,bls->brs', Kt, Qg, Kt)),
                            axis1=-2, axis2=-1)
            kl_t = (0.5 * (qp + tr + jnp.linalg.slogdet(IM)[1])).mean(axis=0)
            mf_l.append(m_f.mean(axis=0))
        zf_l.append(z_f)
        zp_l.append(z_p)
        kl_l.append(kl_t)
        z_prev = z_f
    return (jnp.stack(zf_l, axis=2),
            {'m_f': jnp.stack(mf_l, axis=1),
             'z_p': jnp.stack(zp_l, axis=2),
             'kl': jnp.stack(kl_l, axis=1)})


if __name__ == "__main__":
    B, T, L, R, S = 2, 8, 8, 4, 4        # trials, time bins, latents, rank, samples
    u_end_dx = 4                          # sum(dynamics_mod.L_K)

    key = jax.random.PRNGKey(0)
    ku, kk, kK, kW, kb, knoise = jax.random.split(key, 6)

    u = 0.1 * jax.random.normal(ku, (B, T, u_end_dx), dtype=jnp.float32)
    k_in = 0.5 * jax.random.normal(kk, (B, T, L), dtype=jnp.float32)
    K_in = 0.3 * jax.random.normal(kK, (B, T, L, R), dtype=jnp.float32)

    # deterministic synthetic "module" parameters
    Q_diag = 0.05 + 0.02 * jnp.arange(L, dtype=jnp.float32)     # dynamics_mod.get_Q()
    Q0_diag = 0.30 + 0.05 * jnp.arange(L, dtype=jnp.float32)    # initial_c_pdf.get_Q_init()
    m_init = 0.1 * jnp.sin(jnp.arange(L, dtype=jnp.float32))    # initial_c_pdf.get_m_init()
    Wd = 0.5 * jax.random.normal(kW, (L, L), dtype=jnp.float32) / jnp.sqrt(L)
    bd = 0.05 * jax.random.normal(kb, (L,), dtype=jnp.float32)

    # time_block=4 -> two time blocks, exercising the cross-block recursion carry
    z_f, stats, eps_z, eps_w = nonlinear_filter_with_input(
        u, k_in, K_in, S, Q_diag=Q_diag, Q0_diag=Q0_diag, m_init=m_init,
        Wd=Wd, bd=bd, u_end_dx=u_end_dx, key=knoise, time_block=4)
    jax.block_until_ready(z_f)

    z_f_ref, stats_ref = reference_forward(
        u, k_in, K_in, S, Q_diag, Q0_diag, m_init, Wd, bd, u_end_dx, eps_z, eps_w)

    np.testing.assert_allclose(np.asarray(z_f), np.asarray(z_f_ref), rtol=2e-3, atol=2e-3)
    np.testing.assert_allclose(np.asarray(stats['m_f']), np.asarray(stats_ref['m_f']),
                               rtol=2e-3, atol=2e-3)
    np.testing.assert_allclose(np.asarray(stats['z_p']), np.asarray(stats_ref['z_p']),
                               rtol=2e-3, atol=2e-3)
    np.testing.assert_allclose(np.asarray(stats['kl']), np.asarray(stats_ref['kl']),
                               rtol=2e-3, atol=2e-3)

    print("KERNEL_OK")
</pallas_src>

<mosaic_0001>
module attributes {stable_mosaic.version = 11 : i64} {
  func.func @_filter_kernel(%arg0: i32, %arg1: i32, %arg2: memref<4x2x8xf32, #tpu.memory_space<vmem>>, %arg3: memref<4x2x8xf32, #tpu.memory_space<vmem>>, %arg4: memref<4x2x8x4xf32, #tpu.memory_space<vmem>>, %arg5: memref<4x2x8x4xf32, #tpu.memory_space<vmem>>, %arg6: memref<4x2x4x8xf32, #tpu.memory_space<vmem>>, %arg7: memref<4x2x4x4xf32, #tpu.memory_space<vmem>>, %arg8: memref<1x8xf32, #tpu.memory_space<vmem>>, %arg9: memref<1x8xf32, #tpu.memory_space<vmem>>, %arg10: memref<1x8xf32, #tpu.memory_space<vmem>>, %arg11: memref<8x8xf32, #tpu.memory_space<vmem>>, %arg12: memref<1x8xf32, #tpu.memory_space<vmem>>, %arg13: memref<4x2x4x8xf32, #tpu.memory_space<vmem>>, %arg14: memref<4x2x8xf32, #tpu.memory_space<vmem>>, %arg15: memref<4x2x1xf32, #tpu.memory_space<vmem>>, %arg16: memref<2x4x8xf32, #tpu.memory_space<vmem>>) attributes {dimension_semantics = [#tpu.dimension_semantics<parallel>, #tpu.dimension_semantics<arbitrary>], iteration_bounds = array<i64: 1, 2>, scalar_prefetch = 0 : i64, scratch_operands = 1 : i64, tpu.core_type = #tpu.core_type<tc>, window_params = [{transform_indices = @transform_0, window_bounds = array<i64: 4, 2, 8>}, {transform_indices = @transform_1, window_bounds = array<i64: 4, 2, 8>}, {transform_indices = @transform_2, window_bounds = array<i64: 4, 2, 8, 4>}, {transform_indices = @transform_3, window_bounds = array<i64: 4, 2, 8, 4>}, {transform_indices = @transform_4, window_bounds = array<i64: 4, 2, 4, 8>}, {transform_indices = @transform_5, window_bounds = array<i64: 4, 2, 4, 4>}, {pipeline_mode = #tpu.pipeline_mode<synchronous>, transform_indices = @transform_6, window_bounds = array<i64: 1, 8>}, {pipeline_mode = #tpu.pipeline_mode<synchronous>, transform_indices = @transform_7, window_bounds = array<i64: 1, 8>}, {pipeline_mode = #tpu.pipeline_mode<synchronous>, transform_indices = @transform_8, window_bounds = array<i64: 1, 8>}, {pipeline_mode = #tpu.pipeline_mode<synchronous>, transform_indices = @transform_9, window_bounds = array<i64: 8, 8>}, {pipeline_mode = #tpu.pipeline_mode<synchronous>, transform_indices = @transform_10, window_bounds = array<i64: 1, 8>}, {transform_indices = @transform_11, window_bounds = array<i64: 4, 2, 4, 8>}, {transform_indices = @transform_12, window_bounds = array<i64: 4, 2, 8>}, {transform_indices = @transform_13, window_bounds = array<i64: 4, 2, 1>}]} {
    %c0 = arith.constant 0 : index
    %c0_0 = arith.constant 0 : index
    %0 = vector.load %arg8[%c0, %c0_0] : memref<1x8xf32, #tpu.memory_space<vmem>>, vector<1x8xf32>
    %1 = vector.shape_cast %0 : vector<1x8xf32> to vector<8xf32>
    %c0_1 = arith.constant 0 : index
    %c0_2 = arith.constant 0 : index
    %2 = vector.load %arg9[%c0_1, %c0_2] : memref<1x8xf32, #tpu.memory_space<vmem>>, vector<1x8xf32>
    %3 = vector.shape_cast %2 : vector<1x8xf32> to vector<8xf32>
    %c0_3 = arith.constant 0 : index
    %c0_4 = arith.constant 0 : index
    %4 = vector.load %arg10[%c0_3, %c0_4] : memref<1x8xf32, #tpu.memory_space<vmem>>, vector<1x8xf32>
    %5 = vector.shape_cast %4 : vector<1x8xf32> to vector<8xf32>
    %c0_5 = arith.constant 0 : index
    %c0_6 = arith.constant 0 : index
    %6 = vector.load %arg11[%c0_5, %c0_6] : memref<8x8xf32, #tpu.memory_space<vmem>>, vector<8x8xf32>
    %c0_7 = arith.constant 0 : index
    %c0_8 = arith.constant 0 : index
    %7 = vector.load %arg12[%c0_7, %c0_8] : memref<1x8xf32, #tpu.memory_space<vmem>>, vector<1x8xf32>
    %8 = vector.shape_cast %7 : vector<1x8xf32> to vector<8xf32>
    %c0_i32 = arith.constant 0 : i32
    %9 = arith.cmpi eq, %arg1, %c0_i32 : i32
    %10 = arith.extui %9 : i1 to i32
    %c0_i32_9 = arith.constant 0 : i32
    %11 = arith.cmpi ne, %10, %c0_i32_9 : i32
    scf.if %11 {
      %cst_181 = arith.constant 0.000000e+00 : f32
      %311 = vector.broadcast %cst_181 : f32 to vector<2x4x8xf32>
      %c0_182 = arith.constant 0 : index
      %c0_183 = arith.constant 0 : index
      %c0_184 = arith.constant 0 : index
      %312 = vector.load %arg16[%c0_182, %c0_183, %c0_184] : memref<2x4x8xf32, #tpu.memory_space<vmem>>, vector<2x4x8xf32>
      tpu.vector_store %arg16[%c0_182, %c0_183, %c0_184], %311 {strides = array<i32>} : memref<2x4x8xf32, #tpu.memory_space<vmem>>, vector<2x4x8xf32>,
    } else {
    }
    %c0_10 = arith.constant 0 : index
    %c0_11 = arith.constant 0 : index
    %c0_12 = arith.constant 0 : index
    %12 = vector.load %arg16[%c0_10, %c0_11, %c0_12] : memref<2x4x8xf32, #tpu.memory_space<vmem>>, vector<2x4x8xf32>
    %c0_13 = arith.constant 0 : index
    %c0_14 = arith.constant 0 : index
    %c0_15 = arith.constant 0 : index
    %13 = vector.load %arg2[%c0_13, %c0_14, %c0_15] : memref<4x2x8xf32, #tpu.memory_space<vmem>>, vector<1x2x8xf32>
    %14 = vector.shape_cast %13 : vector<1x2x8xf32> to vector<2x8xf32>
    %c0_16 = arith.constant 0 : index
    %c0_17 = arith.constant 0 : index
    %c0_18 = arith.constant 0 : index
    %15 = vector.load %arg3[%c0_16, %c0_17, %c0_18] : memref<4x2x8xf32, #tpu.memory_space<vmem>>, vector<1x2x8xf32>
    %16 = vector.shape_cast %15 : vector<1x2x8xf32> to vector<2x8xf32>
    %c0_19 = arith.constant 0 : index
    %c0_20 = arith.constant 0 : index
    %c0_21 = arith.constant 0 : index
    %c0_22 = arith.constant 0 : index
    %17 = vector.load %arg4[%c0_19, %c0_20, %c0_21, %c0_22] : memref<4x2x8x4xf32, #tpu.memory_space<vmem>>, vector<1x2x8x4xf32>
    %18 = vector.shape_cast %17 : vector<1x2x8x4xf32> to vector<2x8x4xf32>
    %c0_23 = arith.constant 0 : index
    %c0_24 = arith.constant 0 : index
    %c0_25 = arith.constant 0 : index
    %c0_26 = arith.constant 0 : index
    %19 = vector.load %arg5[%c0_23, %c0_24, %c0_25, %c0_26] : memref<4x2x8x4xf32, #tpu.memory_space<vmem>>, vector<1x2x8x4xf32>
    %20 = vector.shape_cast %19 : vector<1x2x8x4xf32> to vector<2x8x4xf32>
    %c0_27 = arith.constant 0 : index
    %c0_28 = arith.constant 0 : index
    %c0_29 = arith.constant 0 : index
    %c0_30 = arith.constant 0 : index
    %21 = vector.load %arg6[%c0_27, %c0_28, %c0_29, %c0_30] : memref<4x2x4x8xf32, #tpu.memory_space<vmem>>, vector<1x2x4x8xf32>
    %22 = vector.shape_cast %21 : vector<1x2x4x8xf32> to vector<2x4x8xf32>
    %c0_31 = arith.constant 0 : index
    %c0_32 = arith.constant 0 : index
    %c0_33 = arith.constant 0 : index
    %c0_34 = arith.constant 0 : index
    %23 = vector.load %arg7[%c0_31, %c0_32, %c0_33, %c0_34] : memref<4x2x4x4xf32, #tpu.memory_space<vmem>>, vector<1x2x4x4xf32>
    %24 = vector.shape_cast %23 : vector<1x2x4x4xf32> to vector<2x4x4xf32>
    %25 = vector.shape_cast %12 : vector<2x4x8xf32> to vector<8x8xf32>
    %cst = arith.constant dense<0.000000e+00> : vector<8x8xf32>
    %26 = tpu.matmul %25, %6, %cst {dimension_numbers = #tpu.dot_dimension_numbers<[1], [0], [0], [1], [0, 0, 1, 1], [], []>} : vector<8x8xf32>, vector<8x8xf32>, vector<8x8xf32> -> vector<8x8xf32>
    %27 = vector.shape_cast %8 : vector<8xf32> to vector<1x8xf32>
    %28 = vector.broadcast %27 : vector<1x8xf32> to vector<8x8xf32>
    %29 = arith.addf %26, %28 : vector<8x8xf32>
    %30 = math.tanh %29 : vector<8x8xf32>
    %31 = vector.shape_cast %30 : vector<8x8xf32> to vector<2x4x8xf32>
    %32 = vector.shape_cast %14 : vector<2x8xf32> to vector<2x1x8xf32>
    %33 = vector.broadcast %32 : vector<2x1x8xf32> to vector<2x4x8xf32>
    %34 = arith.addf %31, %33 : vector<2x4x8xf32>
    %c0_i32_35 = arith.constant 0 : i32
    %35 = arith.cmpi eq, %arg1, %c0_i32_35 : i32
    %36 = vector.shape_cast %5 : vector<8xf32> to vector<1x8xf32>
    %37 = vector.broadcast %36 : vector<1x8xf32> to vector<2x8xf32>
    %38 = arith.addf %37, %14 : vector<2x8xf32>
    %39 = vector.shape_cast %38 : vector<2x8xf32> to vector<2x1x8xf32>
    %40 = vector.shape_cast %39 : vector<2x1x8xf32> to vector<2x1x8xf32>
    %41 = vector.broadcast %40 : vector<2x1x8xf32> to vector<2x4x8xf32>
    %42 = arith.select %35, %41, %34 : vector<2x4x8xf32>
    %43 = arith.select %35, %3, %1 : vector<8xf32>
    %44 = math.sqrt %43 : vector<8xf32>
    %45 = vector.shape_cast %44 : vector<8xf32> to vector<1x1x8xf32>
    %46 = vector.broadcast %45 : vector<1x1x8xf32> to vector<2x4x8xf32>
    %47 = arith.mulf %46, %22 : vector<2x4x8xf32>
    %48 = vector.shape_cast %1 : vector<8xf32> to vector<1x8xf32>
    %49 = vector.broadcast %48 : vector<1x8xf32> to vector<2x8xf32>
    %50 = arith.mulf %49, %16 : vector<2x8xf32>
    %51 = vector.shape_cast %50 : vector<2x8xf32> to vector<2x1x8xf32>
    %52 = vector.broadcast %51 : vector<2x1x8xf32> to vector<2x4x8xf32>
    %53 = arith.addf %42, %52 : vector<2x4x8xf32>
    %54 = tpu.concatenate %53, %47 in 1 : vector<2x4x8xf32>, vector<2x4x8xf32> -> vector<2x8x8xf32>
    "tpu.trace_start"() <{level = 10 : i32, message = "bsl,blr->bsr"}> : () -> ()
    %cst_36 = arith.constant dense<0.000000e+00> : vector<2x8x4xf32>
    %55 = tpu.matmul %54, %18, %cst_36 {dimension_numbers = #tpu.dot_dimension_numbers<[2], [1], [1], [2], [0, 0, 0, 1, 1, 2], [0], [0]>} : vector<2x8x8xf32>, vector<2x8x4xf32>, vector<2x8x4xf32> -> vector<2x8x4xf32>
    %cst_37 = arith.constant 0.000000e+00 : f32
    "tpu.trace_stop"() : () -> ()
    %56 = vector.broadcast %cst_37 : f32 to vector<2x4x4xf32>
    %57 = tpu.concatenate %56, %24 in 1 : vector<2x4x4xf32>, vector<2x4x4xf32> -> vector<2x8x4xf32>
    %58 = arith.addf %55, %57 : vector<2x8x4xf32>
    "tpu.trace_start"() <{level = 10 : i32, message = "bsr,blr->bsl"}> : () -> ()
    %cst_38 = arith.constant dense<0.000000e+00> : vector<2x8x8xf32>
    %59 = tpu.matmul %58, %20, %cst_38 {dimension_numbers = #tpu.dot_dimension_numbers<[2], [2], [1], [1], [0, 0, 0, 1, 1, 1], [0], [0]>} : vector<2x8x4xf32>, vector<2x8x4xf32>, vector<2x8x8xf32> -> vector<2x8x8xf32>
    "tpu.trace_stop"() : () -> ()
    %60 = vector.shape_cast %16 : vector<2x8xf32> to vector<2x1x8xf32>
    %61 = vector.extract_strided_slice %59 {offsets = [0, 0, 0], sizes = [2, 4, 8], strides = [1, 1, 1]} : vector<2x8x8xf32> to vector<2x4x8xf32>
    %62 = vector.broadcast %60 : vector<2x1x8xf32> to vector<2x4x8xf32>
    %63 = arith.subf %62, %61 : vector<2x4x8xf32>
    %64 = vector.shape_cast %43 : vector<8xf32> to vector<1x1x8xf32>
    %65 = vector.broadcast %64 : vector<1x1x8xf32> to vector<2x4x8xf32>
    %66 = arith.mulf %65, %63 : vector<2x4x8xf32>
    %67 = arith.addf %42, %66 : vector<2x4x8xf32>
    %68 = arith.addf %67, %47 : vector<2x4x8xf32>
    %69 = vector.extract_strided_slice %59 {offsets = [0, 4, 0], sizes = [2, 4, 8], strides = [1, 1, 1]} : vector<2x8x8xf32> to vector<2x4x8xf32>
    %70 = arith.subf %68, %69 : vector<2x4x8xf32>
    %71 = vector.shape_cast %43 : vector<8xf32> to vector<1x1x8xf32>
    %72 = vector.broadcast %71 : vector<1x1x8xf32> to vector<2x4x8xf32>
    %73 = arith.mulf %72, %63 : vector<2x4x8xf32>
    %74 = arith.mulf %73, %63 : vector<2x4x8xf32>
    %cst_39 = arith.constant dense<0.000000e+00> : vector<2x4xf32>
    %75 = vector.multi_reduction <add>, %74, %cst_39 [2] : vector<2x4x8xf32> to vector<2x4xf32>
    %c0_40 = arith.constant 0 : index
    %c0_41 = arith.constant 0 : index
    %c0_42 = arith.constant 0 : index
    %c0_43 = arith.constant 0 : index
    %76 = vector.load %arg13[%c0_40, %c0_41, %c0_42, %c0_43] : memref<4x2x4x8xf32, #tpu.memory_space<vmem>>, vector<1x2x4x8xf32>
    %77 = vector.shape_cast %76 : vector<1x2x4x8xf32> to vector<2x4x8xf32>
    %78 = vector.shape_cast %70 : vector<2x4x8xf32> to vector<1x2x4x8xf32>
    tpu.vector_store %arg13[%c0_40, %c0_41, %c0_42, %c0_43], %78 {strides = array<i32>} : memref<4x2x4x8xf32, #tpu.memory_space<vmem>>, vector<1x2x4x8xf32>,
    %cst_44 = arith.constant dense<0.000000e+00> : vector<2x8xf32>
    %79 = vector.multi_reduction <add>, %67, %cst_44 [1] : vector<2x4x8xf32> to vector<2x8xf32>
    %cst_45 = arith.constant 4.000000e+00 : f32
    %80 = vector.broadcast %cst_45 : f32 to vector<2x8xf32>
    %81 = arith.divf %79, %80 : vector<2x8xf32>
    %c0_46 = arith.constant 0 : index
    %c0_47 = arith.constant 0 : index
    %c0_48 = arith.constant 0 : index
    %82 = vector.load %arg14[%c0_46, %c0_47, %c0_48] : memref<4x2x8xf32, #tpu.memory_space<vmem>>, vector<1x2x8xf32>
    %83 = vector.shape_cast %82 : vector<1x2x8xf32> to vector<2x8xf32>
    %84 = vector.shape_cast %81 : vector<2x8xf32> to vector<1x2x8xf32>
    tpu.vector_store %arg14[%c0_46, %c0_47, %c0_48], %84 {strides = array<i32>} : memref<4x2x8xf32, #tpu.memory_space<vmem>>, vector<1x2x8xf32>,
    %cst_49 = arith.constant dense<0.000000e+00> : vector<2xf32>
    %85 = vector.multi_reduction <add>, %75, %cst_49 [1] : vector<2x4xf32> to vector<2xf32>
    %cst_50 = arith.constant 4.000000e+00 : f32
    %86 = vector.broadcast %cst_50 : f32 to vector<2xf32>
    %87 = arith.divf %85, %86 : vector<2xf32>
    %cst_51 = arith.constant 5.000000e-01 : f32
    %88 = vector.broadcast %cst_51 : f32 to vector<2xf32>
    %89 = arith.mulf %88, %87 : vector<2xf32>
    %90 = vector.shape_cast %89 : vector<2xf32> to vector<2x1xf32>
    %c0_52 = arith.constant 0 : index
    %c0_53 = arith.constant 0 : index
    %c0_54 = arith.constant 0 : index
    %91 = vector.load %arg15[%c0_52, %c0_53, %c0_54] : memref<4x2x1xf32, #tpu.memory_space<vmem>>, vector<1x2x1xf32>
    %92 = vector.shape_cast %91 : vector<1x2x1xf32> to vector<2x1xf32>
    %93 = vector.shape_cast %90 : vector<2x1xf32> to vector<1x2x1xf32>
    tpu.vector_store %arg15[%c0_52, %c0_53, %c0_54], %93 {strides = array<i32>} : memref<4x2x1xf32, #tpu.memory_space<vmem>>, vector<1x2x1xf32>,
    %c1 = arith.constant 1 : index
    %c0_55 = arith.constant 0 : index
    %c0_56 = arith.constant 0 : index
    %94 = vector.load %arg2[%c1, %c0_55, %c0_56] : memref<4x2x8xf32, #tpu.memory_space<vmem>>, vector<1x2x8xf32>
    %95 = vector.shape_cast %94 : vector<1x2x8xf32> to vector<2x8xf32>
    %c1_57 = arith.constant 1 : index
    %c0_58 = arith.constant 0 : index
    %c0_59 = arith.constant 0 : index
    %96 = vector.load %arg3[%c1_57, %c0_58, %c0_59] : memref<4x2x8xf32, #tpu.memory_space<vmem>>, vector<1x2x8xf32>
    %97 = vector.shape_cast %96 : vector<1x2x8xf32> to vector<2x8xf32>
    %c1_60 = arith.constant 1 : index
    %c0_61 = arith.constant 0 : index
    %c0_62 = arith.constant 0 : index
    %c0_63 = arith.constant 0 : index
    %98 = vector.load %arg4[%c1_60, %c0_61, %c0_62, %c0_63] : memref<4x2x8x4xf32, #tpu.memory_space<vmem>>, vector<1x2x8x4xf32>
    %99 = vector.shape_cast %98 : vector<1x2x8x4xf32> to vector<2x8x4xf32>
    %c1_64 = arith.constant 1 : index
    %c0_65 = arith.constant 0 : index
    %c0_66 = arith.constant 0 : index
    %c0_67 = arith.constant 0 : index
    %100 = vector.load %arg5[%c1_64, %c0_65, %c0_66, %c0_67] : memref<4x2x8x4xf32, #tpu.memory_space<vmem>>, vector<1x2x8x4xf32>
    %101 = vector.shape_cast %100 : vector<1x2x8x4xf32> to vector<2x8x4xf32>
    %c1_68 = arith.constant 1 : index
    %c0_69 = arith.constant 0 : index
    %c0_70 = arith.constant 0 : index
    %c0_71 = arith.constant 0 : index
    %102 = vector.load %arg6[%c1_68, %c0_69, %c0_70, %c0_71] : memref<4x2x4x8xf32, #tpu.memory_space<vmem>>, vector<1x2x4x8xf32>
    %103 = vector.shape_cast %102 : vector<1x2x4x8xf32> to vector<2x4x8xf32>
    %c1_72 = arith.constant 1 : index
    %c0_73 = arith.constant 0 : index
    %c0_74 = arith.constant 0 : index
    %c0_75 = arith.constant 0 : index
    %104 = vector.load %arg7[%c1_72, %c0_73, %c0_74, %c0_75] : memref<4x2x4x4xf32, #tpu.memory_space<vmem>>, vector<1x2x4x4xf32>
    %105 = vector.shape_cast %104 : vector<1x2x4x4xf32> to vector<2x4x4xf32>
    %106 = vector.shape_cast %70 : vector<2x4x8xf32> to vector<8x8xf32>
    %cst_76 = arith.constant dense<0.000000e+00> : vector<8x8xf32>
    %107 = tpu.matmul %106, %6, %cst_76 {dimension_numbers = #tpu.dot_dimension_numbers<[1], [0], [0], [1], [0, 0, 1, 1], [], []>} : vector<8x8xf32>, vector<8x8xf32>, vector<8x8xf32> -> vector<8x8xf32>
    %108 = vector.shape_cast %8 : vector<8xf32> to vector<1x8xf32>
    %109 = vector.broadcast %108 : vector<1x8xf32> to vector<8x8xf32>
    %110 = arith.addf %107, %109 : vector<8x8xf32>
    %111 = math.tanh %110 : vector<8x8xf32>
    %112 = vector.shape_cast %111 : vector<8x8xf32> to vector<2x4x8xf32>
    %113 = vector.shape_cast %95 : vector<2x8xf32> to vector<2x1x8xf32>
    %114 = vector.broadcast %113 : vector<2x1x8xf32> to vector<2x4x8xf32>
    %115 = arith.addf %112, %114 : vector<2x4x8xf32>
    %116 = math.sqrt %1 : vector<8xf32>
    %117 = vector.shape_cast %116 : vector<8xf32> to vector<1x1x8xf32>
    %118 = vector.broadcast %117 : vector<1x1x8xf32> to vector<2x4x8xf32>
    %119 = arith.mulf %118, %103 : vector<2x4x8xf32>
    %120 = vector.shape_cast %1 : vector<8xf32> to vector<1x8xf32>
    %121 = vector.broadcast %120 : vector<1x8xf32> to vector<2x8xf32>
    %122 = arith.mulf %121, %97 : vector<2x8xf32>
    %123 = vector.shape_cast %122 : vector<2x8xf32> to vector<2x1x8xf32>
    %124 = vector.broadcast %123 : vector<2x1x8xf32> to vector<2x4x8xf32>
    %125 = arith.addf %115, %124 : vector<2x4x8xf32>
    %126 = tpu.concatenate %125, %119 in 1 : vector<2x4x8xf32>, vector<2x4x8xf32> -> vector<2x8x8xf32>
    "tpu.trace_start"() <{level = 10 : i32, message = "bsl,blr->bsr"}> : () -> ()
    %cst_77 = arith.constant dense<0.000000e+00> : vector<2x8x4xf32>
    %127 = tpu.matmul %126, %99, %cst_77 {dimension_numbers = #tpu.dot_dimension_numbers<[2], [1], [1], [2], [0, 0, 0, 1, 1, 2], [0], [0]>} : vector<2x8x8xf32>, vector<2x8x4xf32>, vector<2x8x4xf32> -> vector<2x8x4xf32>
    %cst_78 = arith.constant 0.000000e+00 : f32
    "tpu.trace_stop"() : () -> ()
    %128 = vector.broadcast %cst_78 : f32 to vector<2x4x4xf32>
    %129 = tpu.concatenate %128, %105 in 1 : vector<2x4x4xf32>, vector<2x4x4xf32> -> vector<2x8x4xf32>
    %130 = arith.addf %127, %129 : vector<2x8x4xf32>
    "tpu.trace_start"() <{level = 10 : i32, message = "bsr,blr->bsl"}> : () -> ()
    %cst_79 = arith.constant dense<0.000000e+00> : vector<2x8x8xf32>
    %131 = tpu.matmul %130, %101, %cst_79 {dimension_numbers = #tpu.dot_dimension_numbers<[2], [2], [1], [1], [0, 0, 0, 1, 1, 1], [0], [0]>} : vector<2x8x4xf32>, vector<2x8x4xf32>, vector<2x8x8xf32> -> vector<2x8x8xf32>
    "tpu.trace_stop"() : () -> ()
    %132 = vector.shape_cast %97 : vector<2x8xf32> to vector<2x1x8xf32>
    %133 = vector.extract_strided_slice %131 {offsets = [0, 0, 0], sizes = [2, 4, 8], strides = [1, 1, 1]} : vector<2x8x8xf32> to vector<2x4x8xf32>
    %134 = vector.broadcast %132 : vector<2x1x8xf32> to vector<2x4x8xf32>
    %135 = arith.subf %134, %133 : vector<2x4x8xf32>
    %136 = vector.shape_cast %1 : vector<8xf32> to vector<1x1x8xf32>
    %137 = vector.broadcast %136 : vector<1x1x8xf32> to vector<2x4x8xf32>
    %138 = arith.mulf %137, %135 : vector<2x4x8xf32>
    %139 = arith.addf %115, %138 : vector<2x4x8xf32>
    %140 = arith.addf %139, %119 : vector<2x4x8xf32>
    %141 = vector.extract_strided_slice %131 {offsets = [0, 4, 0], sizes = [2, 4, 8], strides = [1, 1, 1]} : vector<2x8x8xf32> to vector<2x4x8xf32>
    %142 = arith.subf %140, %141 : vector<2x4x8xf32>
    %143 = vector.shape_cast %1 : vector<8xf32> to vector<1x1x8xf32>
    %144 = vector.broadcast %143 : vector<1x1x8xf32> to vector<2x4x8xf32>
    %145 = arith.mulf %144, %135 : vector<2x4x8xf32>
    %146 = arith.mulf %145, %135 : vector<2x4x8xf32>
    %cst_80 = arith.constant dense<0.000000e+00> : vector<2x4xf32>
    %147 = vector.multi_reduction <add>, %146, %cst_80 [2] : vector<2x4x8xf32> to vector<2x4xf32>
    %c1_81 = arith.constant 1 : index
    %c0_82 = arith.constant 0 : index
    %c0_83 = arith.constant 0 : index
    %c0_84 = arith.constant 0 : index
    %148 = vector.load %arg13[%c1_81, %c0_82, %c0_83, %c0_84] : memref<4x2x4x8xf32, #tpu.memory_space<vmem>>, vector<1x2x4x8xf32>
    %149 = vector.shape_cast %148 : vector<1x2x4x8xf32> to vector<2x4x8xf32>
    %150 = vector.shape_cast %142 : vector<2x4x8xf32> to vector<1x2x4x8xf32>
    tpu.vector_store %arg13[%c1_81, %c0_82, %c0_83, %c0_84], %150 {strides = array<i32>} : memref<4x2x4x8xf32, #tpu.memory_space<vmem>>, vector<1x2x4x8xf32>,
    %cst_85 = arith.constant dense<0.000000e+00> : vector<2x8xf32>
    %151 = vector.multi_reduction <add>, %139, %cst_85 [1] : vector<2x4x8xf32> to vector<2x8xf32>
    %cst_86 = arith.constant 4.000000e+00 : f32
    %152 = vector.broadcast %cst_86 : f32 to vector<2x8xf32>
    %153 = arith.divf %151, %152 : vector<2x8xf32>
    %c1_87 = arith.constant 1 : index
    %c0_88 = arith.constant 0 : index
    %c0_89 = arith.constant 0 : index
    %154 = vector.load %arg14[%c1_87, %c0_88, %c0_89] : memref<4x2x8xf32, #tpu.memory_space<vmem>>, vector<1x2x8xf32>
    %155 = vector.shape_cast %154 : vector<1x2x8xf32> to vector<2x8xf32>
    %156 = vector.shape_cast %153 : vector<2x8xf32> to vector<1x2x8xf32>
    tpu.vector_store %arg14[%c1_87, %c0_88, %c0_89], %156 {strides = array<i32>} : memref<4x2x8xf32, #tpu.memory_space<vmem>>, vector<1x2x8xf32>,
    %cst_90 = arith.constant dense<0.000000e+00> : vector<2xf32>
    %157 = vector.multi_reduction <add>, %147, %cst_90 [1] : vector<2x4xf32> to vector<2xf32>
    %cst_91 = arith.constant 4.000000e+00 : f32
    %158 = vector.broadcast %cst_91 : f32 to vector<2xf32>
    %159 = arith.divf %157, %158 : vector<2xf32>
    %cst_92 = arith.constant 5.000000e-01 : f32
    %160 = vector.broadcast %cst_92 : f32 to vector<2xf32>
    %161 = arith.mulf %160, %159 : vector<2xf32>
    %162 = vector.shape_cast %161 : vector<2xf32> to vector<2x1xf32>
    %c1_93 = arith.constant 1 : index
    %c0_94 = arith.constant 0 : index
    %c0_95 = arith.constant 0 : index
    %163 = vector.load %arg15[%c1_93, %c0_94, %c0_95] : memref<4x2x1xf32, #tpu.memory_space<vmem>>, vector<1x2x1xf32>
    %164 = vector.shape_cast %163 : vector<1x2x1xf32> to vector<2x1xf32>
    %165 = vector.shape_cast %162 : vector<2x1xf32> to vector<1x2x1xf32>
    tpu.vector_store %arg15[%c1_93, %c0_94, %c0_95], %165 {strides = array<i32>} : memref<4x2x1xf32, #tpu.memory_space<vmem>>, vector<1x2x1xf32>,
    %c2 = arith.constant 2 : index
    %c0_96 = arith.constant 0 : index
    %c0_97 = arith.constant 0 : index
    %166 = vector.load %arg2[%c2, %c0_96, %c0_97] : memref<4x2x8xf32, #tpu.memory_space<vmem>>, vector<1x2x8xf32>
    %167 = vector.shape_cast %166 : vector<1x2x8xf32> to vector<2x8xf32>
    %c2_98 = arith.constant 2 : index
    %c0_99 = arith.constant 0 : index
    %c0_100 = arith.constant 0 : index
    %168 = vector.load %arg3[%c2_98, %c0_99, %c0_100] : memref<4x2x8xf32, #tpu.memory_space<vmem>>, vector<1x2x8xf32>
    %169 = vector.shape_cast %168 : vector<1x2x8xf32> to vector<2x8xf32>
    %c2_101 = arith.constant 2 : index
    %c0_102 = arith.constant 0 : index
    %c0_103 = arith.constant 0 : index
    %c0_104 = arith.constant 0 : index
    %170 = vector.load %arg4[%c2_101, %c0_102, %c0_103, %c0_104] : memref<4x2x8x4xf32, #tpu.memory_space<vmem>>, vector<1x2x8x4xf32>
    %171 = vector.shape_cast %170 : vector<1x2x8x4xf32> to vector<2x8x4xf32>
    %c2_105 = arith.constant 2 : index
    %c0_106 = arith.constant 0 : index
    %c0_107 = arith.constant 0 : index
    %c0_108 = arith.constant 0 : index
    %172 = vector.load %arg5[%c2_105, %c0_106, %c0_107, %c0_108] : memref<4x2x8x4xf32, #tpu.memory_space<vmem>>, vector<1x2x8x4xf32>
    %173 = vector.shape_cast %172 : vector<1x2x8x4xf32> to vector<2x8x4xf32>
    %c2_109 = arith.constant 2 : index
    %c0_110 = arith.constant 0 : index
    %c0_111 = arith.constant 0 : index
    %c0_112 = arith.constant 0 : index
    %174 = vector.load %arg6[%c2_109, %c0_110, %c0_111, %c0_112] : memref<4x2x4x8xf32, #tpu.memory_space<vmem>>, vector<1x2x4x8xf32>
    %175 = vector.shape_cast %174 : vector<1x2x4x8xf32> to vector<2x4x8xf32>
    %c2_113 = arith.constant 2 : index
    %c0_114 = arith.constant 0 : index
    %c0_115 = arith.constant 0 : index
    %c0_116 = arith.constant 0 : index
    %176 = vector.load %arg7[%c2_113, %c0_114, %c0_115, %c0_116] : memref<4x2x4x4xf32, #tpu.memory_space<vmem>>, vector<1x2x4x4xf32>
    %177 = vector.shape_cast %176 : vector<1x2x4x4xf32> to vector<2x4x4xf32>
    %178 = vector.shape_cast %142 : vector<2x4x8xf32> to vector<8x8xf32>
    %cst_117 = arith.constant dense<0.000000e+00> : vector<8x8xf32>
    %179 = tpu.matmul %178, %6, %cst_117 {dimension_numbers = #tpu.dot_dimension_numbers<[1], [0], [0], [1], [0, 0, 1, 1], [], []>} : vector<8x8xf32>, vector<8x8xf32>, vector<8x8xf32> -> vector<8x8xf32>
    %180 = vector.shape_cast %8 : vector<8xf32> to vector<1x8xf32>
    %181 = vector.broadcast %180 : vector<1x8xf32> to vector<8x8xf32>
    %182 = arith.addf %179, %181 : vector<8x8xf32>
    %183 = math.tanh %182 : vector<8x8xf32>
    %184 = vector.shape_cast %183 : vector<8x8xf32> to vector<2x4x8xf32>
    %185 = vector.shape_cast %167 : vector<2x8xf32> to vector<2x1x8xf32>
    %186 = vector.broadcast %185 : vector<2x1x8xf32> to vector<2x4x8xf32>
    %187 = arith.addf %184, %186 : vector<2x4x8xf32>
    %188 = math.sqrt %1 : vector<8xf32>
    %189 = vector.shape_cast %188 : vector<8xf32> to vector<1x1x8xf32>
    %190 = vector.broadcast %189 : vector<1x1x8xf32> to vector<2x4x8xf32>
    %191 = arith.mulf %190, %175 : vector<2x4x8xf32>
    %192 = vector.shape_cast %1 : vector<8xf32> to vector<1x8xf32>
    %193 = vector.broadcast %192 : vector<1x8xf32> to vector<2x8xf32>
    %194 = arith.mulf %193, %169 : vector<2x8xf32>
    %195 = vector.shape_cast %194 : vector<2x8xf32> to vector<2x1x8xf32>
    %196 = vector.broadcast %195 : vector<2x1x8xf32> to vector<2x4x8xf32>
    %197 = arith.addf %187, %196 : vector<2x4x8xf32>
    %198 = tpu.concatenate %197, %191 in 1 : vector<2x4x8xf32>, vector<2x4x8xf32> -> vector<2x8x8xf32>
    "tpu.trace_start"() <{level = 10 : i32, message = "bsl,blr->bsr"}> : () -> ()
    %cst_118 = arith.constant dense<0.000000e+00> : vector<2x8x4xf32>
    %199 = tpu.matmul %198, %171, %cst_118 {dimension_numbers = #tpu.dot_dimension_numbers<[2], [1], [1], [2], [0, 0, 0, 1, 1, 2], [0], [0]>} : vector<2x8x8xf32>, vector<2x8x4xf32>, vector<2x8x4xf32> -> vector<2x8x4xf32>
    %cst_119 = arith.constant 0.000000e+00 : f32
    "tpu.trace_stop"() : () -> ()
    %200 = vector.broadcast %cst_119 : f32 to vector<2x4x4xf32>
    %201 = tpu.concatenate %200, %177 in 1 : vector<2x4x4xf32>, vector<2x4x4xf32> -> vector<2x8x4xf32>
    %202 = arith.addf %199, %201 : vector<2x8x4xf32>
    "tpu.trace_start"() <{level = 10 : i32, message = "bsr,blr->bsl"}> : () -> ()
    %cst_120 = arith.constant dense<0.000000e+00> : vector<2x8x8xf32>
    %203 = tpu.matmul %202, %173, %cst_120 {dimension_numbers = #tpu.dot_dimension_numbers<[2], [2], [1], [1], [0, 0, 0, 1, 1, 1], [0], [0]>} : vector<2x8x4xf32>, vector<2x8x4xf32>, vector<2x8x8xf32> -> vector<2x8x8xf32>
    "tpu.trace_stop"() : () -> ()
    %204 = vector.shape_cast %169 : vector<2x8xf32> to vector<2x1x8xf32>
    %205 = vector.extract_strided_slice %203 {offsets = [0, 0, 0], sizes = [2, 4, 8], strides = [1, 1, 1]} : vector<2x8x8xf32> to vector<2x4x8xf32>
    %206 = vector.broadcast %204 : vector<2x1x8xf32> to vector<2x4x8xf32>
    %207 = arith.subf %206, %205 : vector<2x4x8xf32>
    %208 = vector.shape_cast %1 : vector<8xf32> to vector<1x1x8xf32>
    %209 = vector.broadcast %208 : vector<1x1x8xf32> to vector<2x4x8xf32>
    %210 = arith.mulf %209, %207 : vector<2x4x8xf32>
    %211 = arith.addf %187, %210 : vector<2x4x8xf32>
    %212 = arith.addf %211, %191 : vector<2x4x8xf32>
    %213 = vector.extract_strided_slice %203 {offsets = [0, 4, 0], sizes = [2, 4, 8], strides = [1, 1, 1]} : vector<2x8x8xf32> to vector<2x4x8xf32>
    %214 = arith.subf %212, %213 : vector<2x4x8xf32>
    %215 = vector.shape_cast %1 : vector<8xf32> to vector<1x1x8xf32>
    %216 = vector.broadcast %215 : vector<1x1x8xf32> to vector<2x4x8xf32>
    %217 = arith.mulf %216, %207 : vector<2x4x8xf32>
    %218 = arith.mulf %217, %207 : vector<2x4x8xf32>
    %cst_121 = arith.constant dense<0.000000e+00> : vector<2x4xf32>
    %219 = vector.multi_reduction <add>, %218, %cst_121 [2] : vector<2x4x8xf32> to vector<2x4xf32>
    %c2_122 = arith.constant 2 : index
    %c0_123 = arith.constant 0 : index
    %c0_124 = arith.constant 0 : index
    %c0_125 = arith.constant 0 : index
    %220 = vector.load %arg13[%c2_122, %c0_123, %c0_124, %c0_125] : memref<4x2x4x8xf32, #tpu.memory_space<vmem>>, vector<1x2x4x8xf32>
    %221 = vector.shape_cast %220 : vector<1x2x4x8xf32> to vector<2x4x8xf32>
    %222 = vector.shape_cast %214 : vector<2x4x8xf32> to vector<1x2x4x8xf32>
    tpu.vector_store %arg13[%c2_122, %c0_123, %c0_124, %c0_125], %222 {strides = array<i32>} : memref<4x2x4x8xf32, #tpu.memory_space<vmem>>, vector<1x2x4x8xf32>,
    %cst_126 = arith.constant dense<0.000000e+00> : vector<2x8xf32>
    %223 = vector.multi_reduction <add>, %211, %cst_126 [1] : vector<2x4x8xf32> to vector<2x8xf32>
    %cst_127 = arith.constant 4.000000e+00 : f32
    %224 = vector.broadcast %cst_127 : f32 to vector<2x8xf32>
    %225 = arith.divf %223, %224 : vector<2x8xf32>
    %c2_128 = arith.constant 2 : index
    %c0_129 = arith.constant 0 : index
    %c0_130 = arith.constant 0 : index
    %226 = vector.load %arg14[%c2_128, %c0_129, %c0_130] : memref<4x2x8xf32, #tpu.memory_space<vmem>>, vector<1x2x8xf32>
    %227 = vector.shape_cast %226 : vector<1x2x8xf32> to vector<2x8xf32>
    %228 = vector.shape_cast %225 : vector<2x8xf32> to vector<1x2x8xf32>
    tpu.vector_store %arg14[%c2_128, %c0_129, %c0_130], %228 {strides = array<i32>} : memref<4x2x8xf32, #tpu.memory_space<vmem>>, vector<1x2x8xf32>,
    %cst_131 = arith.constant dense<0.000000e+00> : vector<2xf32>
    %229 = vector.multi_reduction <add>, %219, %cst_131 [1] : vector<2x4xf32> to vector<2xf32>
    %cst_132 = arith.constant 4.000000e+00 : f32
    %230 = vector.broadcast %cst_132 : f32 to vector<2xf32>
    %231 = arith.divf %229, %230 : vector<2xf32>
    %cst_133 = arith.constant 5.000000e-01 : f32
    %232 = vector.broadcast %cst_133 : f32 to vector<2xf32>
    %233 = arith.mulf %232, %231 : vector<2xf32>
    %234 = vector.shape_cast %233 : vector<2xf32> to vector<2x1xf32>
    %c2_134 = arith.constant 2 : index
    %c0_135 = arith.constant 0 : index
    %c0_136 = arith.constant 0 : index
    %235 = vector.load %arg15[%c2_134, %c0_135, %c0_136] : memref<4x2x1xf32, #tpu.memory_space<vmem>>, vector<1x2x1xf32>
    %236 = vector.shape_cast %235 : vector<1x2x1xf32> to vector<2x1xf32>
    %237 = vector.shape_cast %234 : vector<2x1xf32> to vector<1x2x1xf32>
    tpu.vector_store %arg15[%c2_134, %c0_135, %c0_136], %237 {strides = array<i32>} : memref<4x2x1xf32, #tpu.memory_space<vmem>>, vector<1x2x1xf32>,
    %c3 = arith.constant 3 : index
    %c0_137 = arith.constant 0 : index
    %c0_138 = arith.constant 0 : index
    %238 = vector.load %arg2[%c3, %c0_137, %c0_138] : memref<4x2x8xf32, #tpu.memory_space<vmem>>, vector<1x2x8xf32>
    %239 = vector.shape_cast %238 : vector<1x2x8xf32> to vector<2x8xf32>
    %c3_139 = arith.constant 3 : index
    %c0_140 = arith.constant 0 : index
    %c0_141 = arith.constant 0 : index
    %240 = vector.load %arg3[%c3_139, %c0_140, %c0_141] : memref<4x2x8xf32, #tpu.memory_space<vmem>>, vector<1x2x8xf32>
    %241 = vector.shape_cast %240 : vector<1x2x8xf32> to vector<2x8xf32>
    %c3_142 = arith.constant 3 : index
    %c0_143 = arith.constant 0 : index
    %c0_144 = arith.constant 0 : index
    %c0_145 = arith.constant 0 : index
    %242 = vector.load %arg4[%c3_142, %c0_143, %c0_144, %c0_145] : memref<4x2x8x4xf32, #tpu.memory_space<vmem>>, vector<1x2x8x4xf32>
    %243 = vector.shape_cast %242 : vector<1x2x8x4xf32> to vector<2x8x4xf32>
    %c3_146 = arith.constant 3 : index
    %c0_147 = arith.constant 0 : index
    %c0_148 = arith.constant 0 : index
    %c0_149 = arith.constant 0 : index
    %244 = vector.load %arg5[%c3_146, %c0_147, %c0_148, %c0_149] : memref<4x2x8x4xf32, #tpu.memory_space<vmem>>, vector<1x2x8x4xf32>
    %245 = vector.shape_cast %244 : vector<1x2x8x4xf32> to vector<2x8x4xf32>
    %c3_150 = arith.constant 3 : index
    %c0_151 = arith.constant 0 : index
    %c0_152 = arith.constant 0 : index
    %c0_153 = arith.constant 0 : index
    %246 = vector.load %arg6[%c3_150, %c0_151, %c0_152, %c0_153] : memref<4x2x4x8xf32, #tpu.memory_space<vmem>>, vector<1x2x4x8xf32>
    %247 = vector.shape_cast %246 : vector<1x2x4x8xf32> to vector<2x4x8xf32>
    %c3_154 = arith.constant 3 : index
    %c0_155 = arith.constant 0 : index
    %c0_156 = arith.constant 0 : index
    %c0_157 = arith.constant 0 : index
    %248 = vector.load %arg7[%c3_154, %c0_155, %c0_156, %c0_157] : memref<4x2x4x4xf32, #tpu.memory_space<vmem>>, vector<1x2x4x4xf32>
    %249 = vector.shape_cast %248 : vector<1x2x4x4xf32> to vector<2x4x4xf32>
    %250 = vector.shape_cast %214 : vector<2x4x8xf32> to vector<8x8xf32>
    %cst_158 = arith.constant dense<0.000000e+00> : vector<8x8xf32>
    %251 = tpu.matmul %250, %6, %cst_158 {dimension_numbers = #tpu.dot_dimension_numbers<[1], [0], [0], [1], [0, 0, 1, 1], [], []>} : vector<8x8xf32>, vector<8x8xf32>, vector<8x8xf32> -> vector<8x8xf32>
    %252 = vector.shape_cast %8 : vector<8xf32> to vector<1x8xf32>
    %253 = vector.broadcast %252 : vector<1x8xf32> to vector<8x8xf32>
    %254 = arith.addf %251, %253 : vector<8x8xf32>
    %255 = math.tanh %254 : vector<8x8xf32>
    %256 = vector.shape_cast %255 : vector<8x8xf32> to vector<2x4x8xf32>
    %257 = vector.shape_cast %239 : vector<2x8xf32> to vector<2x1x8xf32>
    %258 = vector.broadcast %257 : vector<2x1x8xf32> to vector<2x4x8xf32>
    %259 = arith.addf %256, %258 : vector<2x4x8xf32>
    %260 = math.sqrt %1 : vector<8xf32>
    %261 = vector.shape_cast %260 : vector<8xf32> to vector<1x1x8xf32>
    %262 = vector.broadcast %261 : vector<1x1x8xf32> to vector<2x4x8xf32>
    %263 = arith.mulf %262, %247 : vector<2x4x8xf32>
    %264 = vector.shape_cast %1 : vector<8xf32> to vector<1x8xf32>
    %265 = vector.broadcast %264 : vector<1x8xf32> to vector<2x8xf32>
    %266 = arith.mulf %265, %241 : vector<2x8xf32>
    %267 = vector.shape_cast %266 : vector<2x8xf32> to vector<2x1x8xf32>
    %268 = vector.broadcast %267 : vector<2x1x8xf32> to vector<2x4x8xf32>
    %269 = arith.addf %259, %268 : vector<2x4x8xf32>
    %270 = tpu.concatenate %269, %263 in 1 : vector<2x4x8xf32>, vector<2x4x8xf32> -> vector<2x8x8xf32>
    "tpu.trace_start"() <{level = 10 : i32, message = "bsl,blr->bsr"}> : () -> ()
    %cst_159 = arith.constant dense<0.000000e+00> : vector<2x8x4xf32>
    %271 = tpu.matmul %270, %243, %cst_159 {dimension_numbers = #tpu.dot_dimension_numbers<[2], [1], [1], [2], [0, 0, 0, 1, 1, 2], [0], [0]>} : vector<2x8x8xf32>, vector<2x8x4xf32>, vector<2x8x4xf32> -> vector<2x8x4xf32>
    %cst_160 = arith.constant 0.000000e+00 : f32
    "tpu.trace_stop"() : () -> ()
    %272 = vector.broadcast %cst_160 : f32 to vector<2x4x4xf32>
    %273 = tpu.concatenate %272, %249 in 1 : vector<2x4x4xf32>, vector<2x4x4xf32> -> vector<2x8x4xf32>
    %274 = arith.addf %271, %273 : vector<2x8x4xf32>
    "tpu.trace_start"() <{level = 10 : i32, message = "bsr,blr->bsl"}> : () -> ()
    %cst_161 = arith.constant dense<0.000000e+00> : vector<2x8x8xf32>
    %275 = tpu.matmul %274, %245, %cst_161 {dimension_numbers = #tpu.dot_dimension_numbers<[2], [2], [1], [1], [0, 0, 0, 1, 1, 1], [0], [0]>} : vector<2x8x4xf32>, vector<2x8x4xf32>, vector<2x8x8xf32> -> vector<2x8x8xf32>
    "tpu.trace_stop"() : () -> ()
    %276 = vector.shape_cast %241 : vector<2x8xf32> to vector<2x1x8xf32>
    %277 = vector.extract_strided_slice %275 {offsets = [0, 0, 0], sizes = [2, 4, 8], strides = [1, 1, 1]} : vector<2x8x8xf32> to vector<2x4x8xf32>
    %278 = vector.broadcast %276 : vector<2x1x8xf32> to vector<2x4x8xf32>
    %279 = arith.subf %278, %277 : vector<2x4x8xf32>
    %280 = vector.shape_cast %1 : vector<8xf32> to vector<1x1x8xf32>
    %281 = vector.broadcast %280 : vector<1x1x8xf32> to vector<2x4x8xf32>
    %282 = arith.mulf %281, %279 : vector<2x4x8xf32>
    %283 = arith.addf %259, %282 : vector<2x4x8xf32>
    %284 = arith.addf %283, %263 : vector<2x4x8xf32>
    %285 = vector.extract_strided_slice %275 {offsets = [0, 4, 0], sizes = [2, 4, 8], strides = [1, 1, 1]} : vector<2x8x8xf32> to vector<2x4x8xf32>
    %286 = arith.subf %284, %285 : vector<2x4x8xf32>
    %287 = vector.shape_cast %1 : vector<8xf32> to vector<1x1x8xf32>
    %288 = vector.broadcast %287 : vector<1x1x8xf32> to vector<2x4x8xf32>
    %289 = arith.mulf %288, %279 : vector<2x4x8xf32>
    %290 = arith.mulf %289, %279 : vector<2x4x8xf32>
    %cst_162 = arith.constant dense<0.000000e+00> : vector<2x4xf32>
    %291 = vector.multi_reduction <add>, %290, %cst_162 [2] : vector<2x4x8xf32> to vector<2x4xf32>
    %c3_163 = arith.constant 3 : index
    %c0_164 = arith.constant 0 : index
    %c0_165 = arith.constant 0 : index
    %c0_166 = arith.constant 0 : index
    %292 = vector.load %arg13[%c3_163, %c0_164, %c0_165, %c0_166] : memref<4x2x4x8xf32, #tpu.memory_space<vmem>>, vector<1x2x4x8xf32>
    %293 = vector.shape_cast %292 : vector<1x2x4x8xf32> to vector<2x4x8xf32>
    %294 = vector.shape_cast %286 : vector<2x4x8xf32> to vector<1x2x4x8xf32>
    tpu.vector_store %arg13[%c3_163, %c0_164, %c0_165, %c0_166], %294 {strides = array<i32>} : memref<4x2x4x8xf32, #tpu.memory_space<vmem>>, vector<1x2x4x8xf32>,
    %cst_167 = arith.constant dense<0.000000e+00> : vector<2x8xf32>
    %295 = vector.multi_reduction <add>, %283, %cst_167 [1] : vector<2x4x8xf32> to vector<2x8xf32>
    %cst_168 = arith.constant 4.000000e+00 : f32
    %296 = vector.broadcast %cst_168 : f32 to vector<2x8xf32>
    %297 = arith.divf %295, %296 : vector<2x8xf32>
    %c3_169 = arith.constant 3 : index
    %c0_170 = arith.constant 0 : index
    %c0_171 = arith.constant 0 : index
    %298 = vector.load %arg14[%c3_169, %c0_170, %c0_171] : memref<4x2x8xf32, #tpu.memory_space<vmem>>, vector<1x2x8xf32>
    %299 = vector.shape_cast %298 : vector<1x2x8xf32> to vector<2x8xf32>
    %300 = vector.shape_cast %297 : vector<2x8xf32> to vector<1x2x8xf32>
    tpu.vector_store %arg14[%c3_169, %c0_170, %c0_171], %300 {strides = array<i32>} : memref<4x2x8xf32, #tpu.memory_space<vmem>>, vector<1x2x8xf32>,
    %cst_172 = arith.constant dense<0.000000e+00> : vector<2xf32>
    %301 = vector.multi_reduction <add>, %291, %cst_172 [1] : vector<2x4xf32> to vector<2xf32>
    %cst_173 = arith.constant 4.000000e+00 : f32
    %302 = vector.broadcast %cst_173 : f32 to vector<2xf32>
    %303 = arith.divf %301, %302 : vector<2xf32>
    %cst_174 = arith.constant 5.000000e-01 : f32
    %304 = vector.broadcast %cst_174 : f32 to vector<2xf32>
    %305 = arith.mulf %304, %303 : vector<2xf32>
    %306 = vector.shape_cast %305 : vector<2xf32> to vector<2x1xf32>
    %c3_175 = arith.constant 3 : index
    %c0_176 = arith.constant 0 : index
    %c0_177 = arith.constant 0 : index
    %307 = vector.load %arg15[%c3_175, %c0_176, %c0_177] : memref<4x2x1xf32, #tpu.memory_space<vmem>>, vector<1x2x1xf32>
    %308 = vector.shape_cast %307 : vector<1x2x1xf32> to vector<2x1xf32>
    %309 = vector.shape_cast %306 : vector<2x1xf32> to vector<1x2x1xf32>
    tpu.vector_store %arg15[%c3_175, %c0_176, %c0_177], %309 {strides = array<i32>} : memref<4x2x1xf32, #tpu.memory_space<vmem>>, vector<1x2x1xf32>,
    %c0_178 = arith.constant 0 : index
    %c0_179 = arith.constant 0 : index
    %c0_180 = arith.constant 0 : index
    %310 = vector.load %arg16[%c0_178, %c0_179, %c0_180] : memref<2x4x8xf32, #tpu.memory_space<vmem>>, vector<2x4x8xf32>
    tpu.vector_store %arg16[%c0_178, %c0_179, %c0_180], %286 {strides = array<i32>} : memref<2x4x8xf32, #tpu.memory_space<vmem>>, vector<2x4x8xf32>,
    return
  }
  func.func @transform_0(%arg0: i32, %arg1: i32) -> (i32, i32, i32) {
    %c0_i32 = arith.constant 0 : i32
    %c0_i32_0 = arith.constant 0 : i32
    return %arg1, %arg0, %c0_i32 : i32, i32, i32
  }
  func.func @transform_1(%arg0: i32, %arg1: i32) -> (i32, i32, i32) {
    %c0_i32 = arith.constant 0 : i32
    %c0_i32_0 = arith.constant 0 : i32
    return %arg1, %arg0, %c0_i32 : i32, i32, i32
  }
  func.func @transform_2(%arg0: i32, %arg1: i32) -> (i32, i32, i32, i32) {
    %c0_i32 = arith.constant 0 : i32
    %c0_i32_0 = arith.constant 0 : i32
    %c0_i32_1 = arith.constant 0 : i32
    return %arg1, %arg0, %c0_i32, %c0_i32_0 : i32, i32, i32, i32
  }
  func.func @transform_3(%arg0: i32, %arg1: i32) -> (i32, i32, i32, i32) {
    %c0_i32 = arith.constant 0 : i32
    %c0_i32_0 = arith.constant 0 : i32
    %c0_i32_1 = arith.constant 0 : i32
    return %arg1, %arg0, %c0_i32, %c0_i32_0 : i32, i32, i32, i32
  }
  func.func @transform_4(%arg0: i32, %arg1: i32) -> (i32, i32, i32, i32) {
    %c0_i32 = arith.constant 0 : i32
    %c0_i32_0 = arith.constant 0 : i32
    %c0_i32_1 = arith.constant 0 : i32
    return %arg1, %arg0, %c0_i32, %c0_i32_0 : i32, i32, i32, i32
  }
  func.func @transform_5(%arg0: i32, %arg1: i32) -> (i32, i32, i32, i32) {
    %c0_i32 = arith.constant 0 : i32
    %c0_i32_0 = arith.constant 0 : i32
    %c0_i32_1 = arith.constant 0 : i32
    return %arg1, %arg0, %c0_i32, %c0_i32_0 : i32, i32, i32, i32
  }
  func.func @transform_6(%arg0: i32, %arg1: i32) -> (i32, i32) {
    %c0_i32 = arith.constant 0 : i32
    %c0_i32_0 = arith.constant 0 : i32
    %c0_i32_1 = arith.constant 0 : i32
    return %c0_i32, %c0_i32_0 : i32, i32
  }
  func.func @transform_7(%arg0: i32, %arg1: i32) -> (i32, i32) {
    %c0_i32 = arith.constant 0 : i32
    %c0_i32_0 = arith.constant 0 : i32
    %c0_i32_1 = arith.constant 0 : i32
    return %c0_i32, %c0_i32_0 : i32, i32
  }
  func.func @transform_8(%arg0: i32, %arg1: i32) -> (i32, i32) {
    %c0_i32 = arith.constant 0 : i32
    %c0_i32_0 = arith.constant 0 : i32
    %c0_i32_1 = arith.constant 0 : i32
    return %c0_i32, %c0_i32_0 : i32, i32
  }
  func.func @transform_9(%arg0: i32, %arg1: i32) -> (i32, i32) {
    %c0_i32 = arith.constant 0 : i32
    %c0_i32_0 = arith.constant 0 : i32
    %c0_i32_1 = arith.constant 0 : i32
    return %c0_i32, %c0_i32_0 : i32, i32
  }
  func.func @transform_10(%arg0: i32, %arg1: i32) -> (i32, i32) {
    %c0_i32 = arith.constant 0 : i32
    %c0_i32_0 = arith.constant 0 : i32
    %c0_i32_1 = arith.constant 0 : i32
    return %c0_i32, %c0_i32_0 : i32, i32
  }
  func.func @transform_11(%arg0: i32, %arg1: i32) -> (i32, i32, i32, i32) {
    %c0_i32 = arith.constant 0 : i32
    %c0_i32_0 = arith.constant 0 : i32
    %c0_i32_1 = arith.constant 0 : i32
    return %arg1, %arg0, %c0_i32, %c0_i32_0 : i32, i32, i32, i32
  }
  func.func @transform_12(%arg0: i32, %arg1: i32) -> (i32, i32, i32) {
    %c0_i32 = arith.constant 0 : i32
    %c0_i32_0 = arith.constant 0 : i32
    return %arg1, %arg0, %c0_i32 : i32, i32, i32
  }
  func.func @transform_13(%arg0: i32, %arg1: i32) -> (i32, i32, i32) {
    %c0_i32 = arith.constant 0 : i32
    %c0_i32_0 = arith.constant 0 : i32
    return %arg1, %arg0, %c0_i32 : i32, i32, i32
  }
}

</mosaic_0001>

<bundles_post_ra>
// kernel: tpu_custom_call.1
= control target key start
LH: loop header
LB: loop body
LE: loop exit
PB: predicated region body
PF: predicated region fallthrough
CT: control target
= control target key end

     0   :  { %s4537_s0 = inlined_call_operand.vmem [shape: f32[8,2,8], index: 0, kind: input, shape index: {}]   ;;  %s4538_s1 = inlined_call_operand.vmem [shape: f32[8,2,8], index: 1, kind: input, shape index: {}]   ;;  %s4539_s2 = inlined_call_operand.vmem [shape: f32[8,2,8,4], index: 2, kind: input, shape index: {}]   ;;  %s4540_s3 = inlined_call_operand.vmem [shape: f32[8,2,8,4], index: 3, kind: input, shape index: {}]   ;;  %s4541_s4 = inlined_call_operand.vmem [shape: f32[8,2,4,8], index: 4, kind: input, shape index: {}]   ;;  %s4542_s5 = inlined_call_operand.vmem [shape: f32[8,2,4,4], index: 5, kind: input, shape index: {}]   ;;  %s4543_s6 = inlined_call_operand.vmem [shape: f32[1,8], index: 6, kind: input, shape index: {}]   ;;  %s4544_s7 = inlined_call_operand.vmem [shape: f32[1,8], index: 7, kind: input, shape index: {}]   ;;  %s4545_s8 = inlined_call_operand.vmem [shape: f32[1,8], index: 8, kind: input, shape index: {}]   ;;  %s4546_s9 = inlined_call_operand.vmem [shape: f32[8,8], index: 9, kind: input, shape index: {}]   ;;  %s4547_s10 = inlined_call_operand.vmem [shape: f32[1,8], index: 10, kind: input, shape index: {}]   ;;  %s4548_s11 = inlined_call_operand.hbm [shape: f32[8,2,4,8], index: 11, kind: output, shape index: {0}]   ;;  %s4549_s12 = inlined_call_operand.hbm [shape: f32[8,2,8], index: 12, kind: output, shape index: {1}]   ;;  %s4550_s13 = inlined_call_operand.vmem [shape: f32[8,2,1], index: 13, kind: output, shape index: {2}]  }
   0x1   :  { %4559 = sst [smem:[#allocation17_spill]] %s4537_s0 }
   0x2   :  { %4560 = sst [smem:[#allocation18_spill]] %s4538_s1 }
   0x3   :  { %4561 = sst [smem:[#allocation19_spill]] %s4539_s2 }
   0x4   :  { %4562 = sst [smem:[#allocation20_spill]] %s4543_s6 }
   0x5   :  { %4563 = sst [smem:[#allocation21_spill]] %s4544_s7 }
   0x6   :  { %4564 = sst [smem:[#allocation22_spill]] %s4545_s8 }
   0x7   :  { %4565 = sst [smem:[#allocation23_spill]] %s4546_s9 }
   0x8   :  { %4566 = sst [smem:[#allocation24_spill]] %s4547_s10 }
   0x9   :  { %19 = vsyncpa [#allocation4], 0 }
   0xa   :  { %21 = vsyncpa [#allocation4 + $0x1], 0 }
   0xb   :  { %22 = vsyncpa [#allocation6], 0 }
   0xc   :  { %24 = vsyncpa [#allocation6 + $0x1], 0  ;;  %s3946_s25 = smov 0   ;;  %s3948_s26 = smov 0  }
   0xd   :  { %s3950_s27 = smov 0   ;;  %s3952_s28 = smov 0  }
   0xe   :  { %s3954_s29 = smov 0   ;;  %s3956_s30 = smov 0  }
   0xf LB: > { %4567 = sst [smem:[#allocation9_spill]] %s3844_s25  ;;  %s3420_s14 = sadd.s32 4294967295, %s3864_s30   ;;  %s3864_s30 = sphi %s3956_s30, %s30_s30   ;;  %s3860_s29 = sphi %s3954_s29, %s4594_s29   ;;  %s3856_s28 = sphi %s3952_s28, %s4593_s28   ;;  %s3852_s27 = sphi %s3950_s27, %s4592_s27   ;;  %s3848_s26 = sphi %s3948_s26, %s4591_s26   ;;  %s3844_s25 = sphi %s3946_s25, %s4590_s25  }
  0x10   : > { %4568 = sst [smem:[#allocation10_spill]] %s3848_s26  ;;  %s3421_s15 = sadd.s32 4294967294, %s3864_s30  }
  0x11   : > { %4569 = sst [smem:[#allocation11_spill]] %s3852_s27  ;;  %s39_s16 = sadd.s32 1, %s3860_s29 }
  0x12   : > { %4570 = sst [smem:[#allocation12_spill]] %s3860_s29  ;;  %s324_s17 = sadd.s32 1, %s3852_s27 }
  0x13   : > { %4571 = sst [smem:[#allocation13_spill]] %s3864_s30  ;;  %p40_p0 = scmp.ge.s32.totalorder %s39_s16, 2 }
  0x14   : > { %p334_p1 = scmp.ne.s32.totalorder %s3852_s27, %s3848_s26  ;;  %p335_p2 = scmp.eq.s32.totalorder %s3420_s14, 1 }
  0x15   : > { %p340_p3 = scmp.ne.s32.totalorder %s3848_s26, %s3844_s25  ;;  %s4596_s16 = smov (%p40_p0, %s39_s16), 0 }
  0x16   : > { %4572 = sst [smem:[#allocation14_spill]] %s4596_s16  ;;  %p3986_p4 = por %p335_p2, %p334_p1 }
  0x17   : > { %p341_p5 = scmp.eq.s32.totalorder %s3421_s15, 1  ;;  %s319_s19 = ssub.s32 %s3860_s29, %s4596_s16 }
  0x18   : > { %p3424_p6 = scmp.ge.s32.totalorder %s3864_s30, 1  ;;  %p322_p7 = scmp.eq.s32.totalorder %s319_s19, 0 }
  0x19   : > { %p3993_p8 = por %p341_p5, %p340_p3  ;;  %p514_p9 = scmp.lt.s32.totalorder %s3864_s30, 3 }
  0x1a   : > { %s3999_s21 = scalar_select %p322_p7, %s3852_s27, %s324_s17  }
  0x1b   : > { %s4574_s20 = scalar_select %p3993_p8, 1, 0 }
  0x1c   : > { %4576 = sst [smem:[#allocation16_spill]] %s3999_s21  ;;  %p515_p10 = pnand %p3424_p6, %p514_p9 }
  0x1d   : > { %4575 = sst [smem:[#allocation15_spill]] %s4574_s20  ;;  %s4002_s22 = sand.u32 (!%p515_p10), 1, %s3848_s26  }
  0x1e   : > { %518 = sbr.rel (%p515_p10) target bundleno = 2801 (0xaf1), region = 64  ;;  %s3427_s23 = sshll.u32 (!%p515_p10), %s3856_s28, 2 }
  0x1f   : > { %s4577_s6 = sld [smem:[#allocation20_spill]] (!%p515_p10)  ;;  %s3425_s17 = sshll.u32 (!%p515_p10), %s4002_s22, 5 }
  0x20   : > { %s4578_s7 = sld [smem:[#allocation21_spill]] (!%p515_p10)  ;;  %s3426_s16 = sshll.u32 (!%p515_p10), %s4002_s22, 3 }
  0x21   : > { %s4579_s8 = sld [smem:[#allocation22_spill]] (!%p515_p10)  ;;  %p623_p11 = scmp.lt.s32.totalorder (!%p515_p10), %s3427_s23, 7 }
  0x22   : > { %s4580_s9 = sld [smem:[#allocation23_spill]] (!%p515_p10)  ;;  %p705_p12 = scmp.eq.s32.totalorder (!%p515_p10), %s3856_s28, 0 }
  0x23   : > { %s4581_s10 = sld [smem:[#allocation24_spill]]  ;;  %s4598_s23 = smov (!%p623_p11, %s3427_s23), 7 }
  0x24   : > { %s3428_s24 = sshll.u32 %s4598_s23, 1  ;;  %s3530_s14 = sshll.u32 %s4598_s23, 4 }
  0x25   : > { %v4008_v0 = vld [vmem:[%s4577_s6] sm:$0x1]  ;;  %s4582_s0 = sld [smem:[#allocation17_spill]]  ;;  %s4052_s19 = scalar_lea.vmem %s4550_s13, %s3428_s24 }
  0x26   : > { %v701_v1 = vld [vmem:[%s4578_s7] sm:$0x1]  ;;  %s4583_s1 = sld [smem:[#allocation18_spill]]  ;;  %p3445_p13 = scmp.ne.s32.totalorder %s3856_s28, 0 }
  0x27   : > { %v3448_v2 = vld [vmem:[%s4579_s8] ss:$0 sm:$0xff]  ;;  %s4584_s2 = sld [smem:[#allocation19_spill]]  ;;  %s4066_s8 = scalar_lea.vmem [#allocation5], %s3426_s16 }
  0x28   : > { %v4021_v3 = vld [vmem:[%s4580_s9] sm:$0xff]  ;;  %s4047_s9 = scalar_lea.vmem %s4540_s3, %s3530_s14 }
  0x29   : > { %v4026_v4 = vld [vmem:[%s4581_s10] ss:$0 sm:$0xff]  ;;  %s3532_s10 = sshll.u32 %s4598_s23, 3  ;;  %708 = sbr.rel (%p3445_p13) target bundleno = 48 (0x30), region = 68 }
  0x2a   : > { %s4057_s21 = scalar_lea.vmem %s4541_s4, %s3532_s10  ;;  %s4062_s27 = scalar_lea.vmem %s4542_s5, %s3532_s10 }
  0x2b   : > { %s4032_s29 = scalar_lea.vmem %s4582_s0, %s3428_s24 }
  0x2c   : > { %s4037_s26 = scalar_lea.vmem %s4583_s1, %s3428_s24 }
  0x2d   : > { %s4042_s25 = scalar_lea.vmem %s4584_s2, %s3530_s14  ;;  %s4064_s2 = scalar_lea.vmem [#allocation3], %s3425_s17 }
  0x2e   : > { %vm709_vm0 = vcmask 60416   ;;  %v3866_v5 = vmov 0.0  }
  0x2f   : > { %710 = vst.msk [vmem:[#allocation2] sm:$0xf] %vm709_vm0, %v3866_v5  ;;  %711 = vst.msk [vmem:[#allocation2 + $0x4] sm:$0xf] %vm709_vm0, %v3866_v5 }
  0x30 PF: > { %v3867_v6 = vmov 0.0   ;;  %vm3868_vm1 = vmmov 0   ;;  %vm733_vm2 = vcmask 64512   ;;  %v717_v8 = vld [vmem:[%s4042_s25 + $0x8] sm:$0xff]  ;;  %v716_v9 = vld [vmem:[%s4042_s25] sm:$0xff]  ;;  %v814_v13 = vlaneseq  ;;  %s3535_s1 = sshll.u32 %s3856_s28, 9 }
  0x31   : > { %3577 = vmatprep.subr.mxu0 %v3867_v6  ;;  %3579 = vmatprep.mubr.msk.f32.mxu0 %vm3868_vm1, %v3867_v6  ;;  %s885_s0 = scalar_select %p705_p12, 1, 0  ;;  %v3869_v15 = vmov 1966171168   ;;  %v714_v20 = vld [vmem:[%s4032_s29] sm:$0x3] }
  0x32   : > { %3578 = vmatpush3.msra.mxu0 %v4021_v3  ;;  %3582 = vmatprep.subr.mxu1 %v3867_v6  ;;  %v4097_v14 = vshrl.u32 %v814_v13, 7  ;;  %v812_v16 = vunpack.c.l.s4 %v3869_v15  ;;  %v4108_v22 = vld [vmem:[%s4037_s26] sm:$0x3]  ;;  %v851_v27 = vadd.f32 %v3448_v2, %v714_v20  ;;  %v721_v46 = vld [vmem:[%s4057_s21 + $0x4] sm:$0xf]  ;;  %vm954_vm6 = vcmask 1043456   ;;  %s4454_s16 = scalar_lea.hbm %s4548_s11, %s3535_s1 }
  0x33   : > { %3587 = vmatprep.subr.mxu0 %v3867_v6  ;;  %3584 = vmatprep.mubr.msk.f32.mxu1 %vm3868_vm1, %v3867_v6  ;;  %v886_v10 = vstv %s885_s0  ;;  %v720_v41 = vld [vmem:[%s4057_s21] sm:$0xf]  ;;  %vm1111_vm7 = vcmask 31744   ;;  %v723_v11 = vld [vmem:[%s4062_s27 + $0x4] sm:$0xf]  ;;  %vm1321_vm8 = vcmask 60416  }
  0x34   : > { %3583 = vmatpush3.msra.mxu1 %v716_v9  ;;  %vm4086_vm3 = vcmp.eq.s32.totalorder %v886_v10, 1  ;;  %v4100_v17 = vsub.s32 0, %v4097_v14  ;;  %v813_v18 = vunpack.c.0.s8 %v812_v16  ;;  %v719_v9 = vld [vmem:[%s4047_s9 + $0x8] sm:$0xff]  ;;  %v722_v10 = vld [vmem:[%s4062_s27] sm:$0xf]  ;;  %v960_v16 = vrot.slane %v723_v11, 4 }
  0x35   : > { %3592 = vmatprep.subr.mxu1 %v3867_v6  ;;  %v4093_v12 = vsel %vm4086_vm3, %v701_v1, %v4008_v0  ;;  %v959_v15 = vrot.slane %v722_v10, 4  ;;  %vm1349_vm9 = vcmask 1041409   ;;  %vm1352_vm10 = vcmask 58368   ;;  %s3141_s23 = scalar_lea.sflag [#allocation4], %s4002_s22  ;;  %s3870_s24 = smov [#allocation3]  }
  0x36   : > { %v3745_v7 = vld [vmem:[#allocation2] sm:$0xff]   ;;  %3746 = vrsqrt.f32 %v4093_v12  ;;  %v4105_v21 = vrot.slane %v4008_v0, %v4100_v17  ;;  %v4111_v23 = vsub.s32 %v813_v18, %v4097_v14  ;;  %vm893_vm4 = vcmp.eq.f32.partialorder %v4093_v12, inf  ;;  %s3762_s14 = sshll.u32 %s3870_s24, 4  ;;  %s3763_s14 = int_to_ptr.vmem [resolvable:$false] %s3762_s14 }
  0x37   : > { %3580 = vmatmul.mubr.msk.f32.vlgmr.msra.gmra.mxu0 %vm733_vm2, %v3745_v7  ;;  %v896_v31 = vand.u32 2147483648, %v4093_v12  ;;  %vm895_vm5 = vcmp.eq.f32.partialorder %v4093_v12, 0.0  ;;  %v963_v18 = vsel %vm954_vm6, 0.0, %v959_v15  ;;  %v3457_v15 = vld [vmem:[%s4042_s25 + $0x10] sm:$0xff]  ;;  %vm1508_vm11 = vcmp.eq.f32.partialorder %v4008_v0, inf }
  0x38   : > { %3589 = vmatprep.mubr.msk.f32.mxu0 %vm3868_vm1, %v3867_v6  ;;  %3588 = vmatpush3.msra.mxu0 %v717_v8  ;;  %v912_v29 = vmul.f32 %v4105_v21, %v4108_v22  ;;  %v817_v30 = vrot.slane %v714_v20, %v4111_v23  ;;  %v859_v33 = vrot.slane %v851_v27, %v4111_v23  ;;  %v718_v8 = vld [vmem:[%s4047_s9] sm:$0xff]  ;;  %v964_v20 = vsel %vm954_vm6, 0.0, %v960_v16  ;;  %v3458_v16 = vld [vmem:[%s4042_s25 + $0x18] sm:$0xff] }
  0x39   : > { %3597 = vmatprep.subr.mxu0 %v3867_v6  ;;  %vm1510_vm12 = vcmp.eq.f32.partialorder %v4008_v0, 0.0  ;;  %vm1368_vm13 = vcmask 25600   ;;  %vm1374_vm14 = vcmask 1024  }
  0x3a   : > { %v920_v34 = vrot.slane %v912_v29, %v4111_v23  ;;  %v818_v35 = vcombine.high %v817_v30, %v817_v30  ;;  %v825_v37 = vrot.slane %v817_v30, %v4111_v23  ;;  %v860_v38 = vcombine.high %v859_v33, %v859_v33 }
  0x3b   : > { %v867_v42 = vrot.slane %v859_v33, %v4111_v23  ;;  %v1271_v29 = vrot.slane %v4108_v22, %v4111_v23 }
  0x3c   : > { %v921_v40 = vcombine.high %v920_v34, %v920_v34  ;;  %v832_v43 = vrot.slane %v818_v35, %v4111_v23  ;;  %v928_v44 = vrot.slane %v920_v34, %v4111_v23  ;;  %v836_v45 = vrot.slane %v825_v37, %v4100_v17 }
  0x3d   : > { %v874_v47 = vrot.slane %v860_v38, %v4111_v23  ;;  %v878_v50 = vrot.slane %v867_v42, %v4100_v17  ;;  %v1272_v30 = vcombine.high %v1271_v29, %v1271_v29  ;;  %v1303_v34 = vrot.slane %v4093_v12, %v4100_v17 }
  0x3e   : > { %v935_v49 = vrot.slane %v921_v40, %v4111_v23  ;;  %v840_v51 = vrot.slane %v832_v43, %v4100_v17  ;;  %v939_v53 = vrot.slane %v928_v44, %v4100_v17 }
  0x3f   : > { %v882_v57 = vrot.slane %v874_v47, %v4100_v17 }
  0x40   : > { %v943_v59 = vrot.slane %v935_v49, %v4100_v17 }
  0x43   : > { %v3747_v19 = vpop.eup %3746 }
  0x44   : > { %v892_v25 = vmul.f32 %v3747_v19, %v4093_v12 }
  0x46   : > { %v894_v32 = vsel %vm893_vm4, %v4093_v12, %v892_v25 }
  0x47   : > { %v897_v36 = vsel %vm895_vm5, %v896_v31, %v894_v32  ;;  %v1279_v31 = vrot.slane %v1271_v29, %v4111_v23  ;;  %v1286_v32 = vrot.slane %v1272_v30, %v4111_v23  ;;  %v3466_v30 = vld.sshfl [vmem:[%s4032_s29 + $0x2] sm:$0x11 pattern:$0x75316420] }
  0x48   : > { %v902_v39 = vrot.slane %v897_v36, %v4100_v17 }
  0x49   : > { %v1290_v33 = vrot.slane %v1279_v31, %v4100_v17  ;;  %v1294_v35 = vrot.slane %v1286_v32, %v4100_v17 }
  0x4a   : > { %v4133_v48 = vmul.f32 %v902_v39, %v720_v41  ;;  %v4139_v54 = vmul.f32 %v902_v39, %v721_v46 }
  0x4c   : > { %v950_v58 = vrot.slane %v4133_v48, 4  ;;  %v951_v63 = vrot.slane %v4139_v54, 4 }
  0xf7   : > { %v802_v24 = vpop.f32.mrf.mxu0 }
  0xf8   : > { %v803_v26 = vadd.f32 %v4026_v4, %v802_v24 }
  0xf9   : > { %v3581_v28 = vpop.f32.mrf.mxu0 }
  0xfa   : > { %3748 = vtanh.f32 %v803_v26 }
  0xfb   : > { %3750 = vrsqrt.f32 %v4008_v0 }
 0x107   : > { %v3749_v52 = vpop.eup %3748 }
 0x108   : > { %v808_v55 = vcombine.high %v3749_v52, %v3749_v52  ;;  %v843_v56 = vadd.f32 %v3749_v52, %v836_v45 }
 0x10a   : > { %v888_v60 = vsel %vm4086_vm3, %v878_v50, %v843_v56  ;;  %v844_v61 = vadd.f32 %v840_v51, %v808_v55 }
 0x10b   : > { %v946_v62 = vadd.f32 %v939_v53, %v888_v60 }
 0x10c   : > { %v889_v1 = vsel %vm4086_vm3, %v882_v57, %v844_v61 }
 0x10d   : > { %v955_v2 = vsel %vm954_vm6, %v946_v62, %v950_v58  ;;  %v947_v5 = vadd.f32 %v943_v59, %v889_v1 }
 0x10e   : > { %3585 = vmatmul.mubr.msk.f32.vlgmr.msra.gmra.mxu1 %vm733_vm2, %v955_v2 }
 0x10f   : > { %v956_v7 = vsel %vm954_vm6, %v947_v5, %v951_v63  ;;  %3594 = vmatprep.mubr.msk.f32.mxu1 %vm3868_vm1, %v3867_v6  ;;  %3593 = vmatpush3.xpose.msk.msra.mxu1 %vm1111_vm7, %v718_v8 }
 0x110   : > { %3590 = vmatmul.mubr.msk.f32.vlgmr.msra.gmra.mxu0 %vm733_vm2, %v956_v7  ;;  %3602 = vmatprep.subr.mxu1 %v3867_v6 }
 0x111   : > { %3599 = vmatprep.mubr.msk.f32.mxu0 %vm3868_vm1, %v3867_v6  ;;  %3598 = vmatpush3.xpose.msk.msra.mxu0 %vm1111_vm7, %v719_v9 }
 0x112   : > { %3607 = vmatprep.subr.mxu0 %v3867_v6 }
 0x1ce   : > { %v1034_v19 = vpop.f32.mrf.mxu1 }
 0x1cf   : > { %v1035_v24 = vadd.f32 %v1034_v19, %v963_v18  ;;  %v3751_v18 = vpop.eup %3750  ;;  %v4205_v19 = vld [vmem:[%s4037_s26 + $0x2] sm:$0x3] }
 0x1d0   : > { %v3586_v25 = vpop.f32.mrf.mxu1  ;;  %v1107_v26 = vpop.f32.mrf.mxu0 }
 0x1d1   : > { %v1108_v27 = vadd.f32 %v1107_v26, %v964_v20  ;;  %3595 = vmatmul.mubr.msk.f32.vlgmr.msra.gmra.mxu1 %vm1111_vm7, %v1035_v24  ;;  %v1507_v20 = vmul.f32 %v3751_v18, %v4008_v0  ;;  %v1521_v26 = vmul.f32 %v4205_v19, %v4105_v21 }
 0x1d2   : > { %v3591_v28 = vpop.f32.mrf.mxu0  ;;  %3603 = vmatpush3.msra.mxu1 %v4021_v3  ;;  %3604 = vmatprep.mubr.msk.f32.mxu1 %vm3868_vm1, %v3867_v6 }
 0x1d3   : > { %3600 = vmatmul.mubr.msk.f32.vlgmr.msra.gmra.mxu0 %vm1111_vm7, %v1108_v27  ;;  %3612 = vmatprep.subr.mxu1 %v3867_v6  ;;  %v1511_v28 = vand.u32 2147483648, %v4008_v0  ;;  %v1509_v29 = vsel %vm1508_vm11, %v4008_v0, %v1507_v20  ;;  %v1529_v31 = vrot.slane %v1521_v26, %v4111_v23 }
 0x1d4   : > { %3609 = vmatprep.mubr.msk.f32.mxu0 %vm3868_vm1, %v3867_v6  ;;  %3608 = vmatpush3.msra.mxu0 %v3457_v15 }
 0x1d5   : > { %3617 = vmatprep.subr.mxu0 %v3867_v6  ;;  %v1512_v32 = vsel %vm1510_vm12, %v1511_v28, %v1509_v29 }
 0x291   : > { %v1184_v36 = vpop.f32.mrf.mxu1 }
 0x292   : > { %v1297_v37 = vsub.f32 %v1290_v33, %v1184_v36  ;;  %v1313_v45 = vrot.slane %v1184_v36, 4  ;;  %v1479_v33 = vcombine.high %v3466_v30, %v3466_v30  ;;  %v1530_v36 = vcombine.high %v1529_v31, %v1529_v31 }
 0x293   : > { %v3596_v38 = vpop.f32.mrf.mxu1  ;;  %v1260_v39 = vpop.f32.mrf.mxu0 }
 0x294   : > { %v1305_v40 = vmul.f32 %v1303_v34, %v1297_v37  ;;  %v1298_v41 = vsub.f32 %v1294_v35, %v1260_v39  ;;  %v1314_v55 = vrot.slane %v1260_v39, 4  ;;  %v4219_v35 = vrot.slane %v1512_v32, %v4100_v17 }
 0x295   : > { %v3601_v22 = vpop.f32.mrf.mxu0  ;;  %v1537_v38 = vrot.slane %v1529_v31, %v4111_v23  ;;  %v1493_v39 = vrot.slane %v1479_v33, %v4111_v23 }
 0x296   : > { %v1307_v42 = vadd.f32 %v1305_v40, %v888_v60  ;;  %v1306_v43 = vmul.f32 %v1303_v34, %v1298_v41  ;;  %v1319_v44 = vmul.f32 %v1305_v40, %v1297_v37  ;;  %v1486_v34 = vrot.slane %v3466_v30, %v4111_v23  ;;  %v3461_v37 = vld [vmem:[%s4057_s21 + $0x8] sm:$0xf]  ;;  %v3462_v40 = vld [vmem:[%s4057_s21 + $0xc] sm:$0xf] }
 0x297   : > { %v1519_v0 = vmul.f32 %v3461_v37, %v4219_v35  ;;  %v1544_v22 = vrot.slane %v1530_v36, %v4111_v23 }
 0x298   : > { %v1309_v46 = vadd.f32 %v1307_v42, %v4133_v48  ;;  %v1330_v47 = vsel %vm1321_vm8, %v1307_v42, 0.0  ;;  %v1308_v12 = vadd.f32 %v1306_v43, %v889_v1  ;;  %v1322_v49 = vsel %vm1321_vm8, %v1319_v44, 0.0 }
 0x299   : > { %v1331_v50 = vrot.slane %v1330_v47, 4  ;;  %1323 = vadd.xlane.f32.xlu0 %v1322_v49  ;;  %v1320_v51 = vmul.f32 %v1306_v43, %v1298_v41  ;;  %v1497_v41 = vrot.slane %v1486_v34, %v4100_v17  ;;  %v1548_v42 = vrot.slane %v1537_v38, %v4100_v17 }
 0x29a   : > { %v1317_v52 = vsub.f32 %v1309_v46, %v1313_v45  ;;  %v1310_v53 = vadd.f32 %v1308_v12, %v4139_v54  ;;  %v1337_v56 = vsel %vm1321_vm8, %v1308_v12, 0.0  ;;  %v1501_v43 = vrot.slane %v1493_v39, %v4100_v17 }
 0x29b   : > { %v1332_v57 = vadd.f32 %v1331_v50, %v1330_v47  ;;  %v1338_v58 = vrot.slane %v1337_v56, 4  ;;  %v1325_v59 = vsel %vm1321_vm8, %v1320_v51, 0.0  ;;  %v4231_v44 = vmul.f32 %v3462_v40, %v4219_v35 }
 0x29c   : > { %1328 = vst.msk [vmem:[%s4064_s2] sm:$0xf] %vm1321_vm8, %v1317_v52  ;;  %v1318_v48 = vsub.f32 %v1310_v53, %v1314_v55  ;;  %v1559_v47 = vrot.slane %v1519_v0, 4  ;;  %v1552_v49 = vrot.slane %v1544_v22, %v4100_v17 }
 0x29d   : > { %v1333_v60 = vrot.slane %v1332_v57, 2  ;;  %v1339_v61 = vadd.f32 %v1338_v58, %v1337_v56  ;;  %1326 = vadd.xlane.f32.xlu0 %v1325_v59  ;;  %v3460_v58 = vld [vmem:[%s4047_s9 + $0x18] sm:$0xff]  ;;  %v3464_v59 = vld [vmem:[%s4062_s27 + $0xc] sm:$0xf] }
 0x29e   : > { %1329 = vst.msk [vmem:[%s4064_s2 + $0x4] sm:$0xf] %vm1321_vm8, %v1318_v48  ;;  %v1394_v62 = vcombine.low %v1317_v52, %v1318_v48  ;;  %v1560_v52 = vrot.slane %v4231_v44, 4  ;;  %v3463_v48 = vld [vmem:[%s4062_s27 + $0x8] sm:$0xf] }
 0x29f   : > { %v1334_v63 = vadd.f32 %v1333_v60, %v1332_v57  ;;  %v1340_v54 = vrot.slane %v1339_v61, 2  ;;  %v3459_v57 = vld [vmem:[%s4047_s9 + $0x10] sm:$0xff]  ;;  %v1567_v60 = vrot.slane %v3463_v48, 4 }
 0x2a0   : > { %3605 = vmatmul.mubr.msk.f32.vlgmr.msra.gmra.mxu1 %vm733_vm2, %v1394_v62 }
 0x2a1   : > { %v1335_v1 = vrot.slane %v1334_v63, 1  ;;  %v1341_v2 = vadd.f32 %v1340_v54, %v1339_v61  ;;  %3614 = vmatprep.mubr.msk.f32.mxu1 %vm3868_vm1, %v3867_v6  ;;  %3613 = vmatpush3.msra.mxu1 %v3458_v16  ;;  %v1568_v61 = vrot.slane %v3464_v59, 4  ;;  %v1571_v62 = vsel %vm954_vm6, 0.0, %v1567_v60  ;;  %v3479_v59 = vld [vmem:[%s4042_s25 + $0x20] sm:$0xff]  ;;  %v3480_v60 = vld [vmem:[%s4042_s25 + $0x28] sm:$0xff] }
 0x2a2   : > { %3622 = vmatprep.subr.mxu1 %v3867_v6 }
 0x2a3   : > { %v1336_v5 = vadd.f32 %v1335_v1, %v1334_v63  ;;  %v1342_v7 = vrot.slane %v1341_v2, 1  ;;  %v1572_v54 = vsel %vm954_vm6, 0.0, %v1568_v61  ;;  %v3478_v61 = vld [vmem:[%s4037_s26 + $0x4] sm:$0x3] }
 0x2a5   : > { %v1343_v8 = vadd.f32 %v1342_v7, %v1341_v2  ;;  %v1345_v9 = vmul.f32 0.25, %v1336_v5 }
 0x2a7   : > { %v1346_v10 = vmul.f32 0.25, %v1343_v8 }
 0x2a9   : > { %v1350_v11 = vsel %vm1349_vm9, %v1346_v10, %v1345_v9  ;;  %v1878_v9 = vrot.slane %v4205_v19, %v4111_v23 }
 0x2aa   : > { %1353 = vst.msk [vmem:[%s4066_s8] sm:$0x3] %vm1352_vm10, %v1350_v11 }
 0x2ab   : > { %v1879_v10 = vcombine.high %v1878_v9, %v1878_v9  ;;  %v1886_v11 = vrot.slane %v1878_v9, %v4111_v23 }
 0x2ad   : > { %v1893_v15 = vrot.slane %v1879_v10, %v4111_v23  ;;  %v1897_v16 = vrot.slane %v1886_v11, %v4100_v17  ;;  %v3483_v10 = vld [vmem:[%s4057_s21 + $0x10] sm:$0xf] }
 0x2af   : > { %v1901_v18 = vrot.slane %v1893_v15, %v4100_v17 }
 0x360   : > { %v1463_v24 = vpop.f32.mrf.mxu1 }
 0x361   : > { %v1464_v25 = vadd.f32 %v4026_v4, %v1463_v24 }
 0x362   : > { %v3606_v27 = vpop.f32.mrf.mxu1 }
 0x363   : > { %3752 = vtanh.f32 %v1464_v25 }
 0x370   : > { %v3753_v45 = vpop.eup %3752 }
 0x371   : > { %v1504_v46 = vadd.f32 %v3753_v45, %v1497_v41  ;;  %v1469_v12 = vcombine.high %v3753_v45, %v3753_v45 }
 0x373   : > { %v1555_v50 = vadd.f32 %v1548_v42, %v1504_v46  ;;  %v1505_v51 = vadd.f32 %v1501_v43, %v1469_v12 }
 0x375   : > { %v1563_v53 = vsel %vm954_vm6, %v1555_v50, %v1559_v47  ;;  %v1556_v55 = vadd.f32 %v1552_v49, %v1505_v51 }
 0x376   : > { %3610 = vmatmul.mubr.msk.f32.vlgmr.msra.gmra.mxu0 %vm733_vm2, %v1563_v53 }
 0x377   : > { %v1564_v56 = vsel %vm954_vm6, %v1556_v55, %v1560_v52  ;;  %3619 = vmatprep.mubr.msk.f32.mxu0 %vm3868_vm1, %v3867_v6  ;;  %3618 = vmatpush3.xpose.msk.msra.mxu0 %vm1111_vm7, %v3459_v57 }
 0x378   : > { %3615 = vmatmul.mubr.msk.f32.vlgmr.msra.gmra.mxu1 %vm733_vm2, %v1564_v56  ;;  %3627 = vmatprep.subr.mxu0 %v3867_v6 }
 0x379   : > { %3624 = vmatprep.mubr.msk.f32.mxu1 %vm3868_vm1, %v3867_v6  ;;  %3623 = vmatpush3.xpose.msk.msra.mxu1 %vm1111_vm7, %v3460_v58 }
 0x37a   : > { %3632 = vmatprep.subr.mxu1 %v3867_v6 }
 0x436   : > { %v1642_v63 = vpop.f32.mrf.mxu0 }
 0x437   : > { %v1643_v1 = vadd.f32 %v1642_v63, %v1571_v62 }
 0x438   : > { %v3611_v2 = vpop.f32.mrf.mxu0  ;;  %v1715_v5 = vpop.f32.mrf.mxu1 }
 0x439   : > { %v1716_v7 = vadd.f32 %v1715_v5, %v1572_v54  ;;  %3620 = vmatmul.mubr.msk.f32.vlgmr.msra.gmra.mxu0 %vm1111_vm7, %v1643_v1  ;;  %v2104_v54 = vmul.f32 %v3478_v61, %v4105_v21  ;;  %v3488_v2 = vld.sshfl [vmem:[%s4032_s29 + $0x4] sm:$0x11 pattern:$0x75316420] }
 0x43a   : > { %v3616_v8 = vpop.f32.mrf.mxu1  ;;  %3628 = vmatpush3.msra.mxu0 %v4021_v3  ;;  %3629 = vmatprep.mubr.msk.f32.mxu0 %vm3868_vm1, %v3867_v6 }
 0x43b   : > { %3625 = vmatmul.mubr.msk.f32.vlgmr.msra.gmra.mxu1 %vm1111_vm7, %v1716_v7  ;;  %3637 = vmatprep.subr.mxu0 %v3867_v6  ;;  %v2112_v5 = vrot.slane %v2104_v54, %v4111_v23  ;;  %v2075_v7 = vcombine.high %v3488_v2, %v3488_v2  ;;  %v2082_v8 = vrot.slane %v3488_v2, %v4111_v23 }
 0x43c   : > { %3634 = vmatprep.mubr.msk.f32.mxu1 %vm3868_vm1, %v3867_v6  ;;  %3633 = vmatpush3.msra.mxu1 %v3479_v59 }
 0x43d   : > { %3642 = vmatprep.subr.mxu1 %v3867_v6  ;;  %v2113_v9 = vcombine.high %v2112_v5, %v2112_v5  ;;  %v2120_v11 = vrot.slane %v2112_v5, %v4111_v23  ;;  %v2089_v15 = vrot.slane %v2075_v7, %v4111_v23 }
 0x4f9   : > { %v1791_v20 = vpop.f32.mrf.mxu0 }
 0x4fa   : > { %v1904_v24 = vsub.f32 %v1897_v16, %v1791_v20  ;;  %v1914_v32 = vcombine.high %v1791_v20, %v1791_v20  ;;  %v3484_v16 = vld [vmem:[%s4057_s21 + $0x14] sm:$0xf]  ;;  %v2102_v20 = vmul.f32 %v3483_v10, %v4219_v35 }
 0x4fb   : > { %v3621_v25 = vpop.f32.mrf.mxu0  ;;  %v1867_v26 = vpop.f32.mrf.mxu1 }
 0x4fc   : > { %v1906_v27 = vmul.f32 %v1904_v24, %v4105_v21  ;;  %v1905_v28 = vsub.f32 %v1901_v18, %v1867_v26  ;;  %v1915_v22 = vcombine.high %v1867_v26, %v1867_v26  ;;  %v2093_v18 = vrot.slane %v2082_v8, %v4100_v17 }
 0x4fd   : > { %v3626_v29 = vpop.f32.mrf.mxu1  ;;  %v2131_v25 = vrot.slane %v2120_v11, %v4100_v17  ;;  %v2097_v26 = vrot.slane %v2089_v15, %v4100_v17 }
 0x4fe   : > { %v1908_v30 = vadd.f32 %v1906_v27, %v1504_v46  ;;  %v1907_v19 = vmul.f32 %v1905_v28, %v4105_v21  ;;  %v1920_v31 = vmul.f32 %v1906_v27, %v1904_v24  ;;  %v2127_v24 = vrot.slane %v2113_v9, %v4111_v23 }
 0x4ff   : > { %v4304_v27 = vmul.f32 %v3484_v16, %v4219_v35 }
 0x500   : > { %v1910_v33 = vadd.f32 %v1908_v30, %v1519_v0  ;;  %v1931_v34 = vsel %vm1321_vm8, %v1908_v30, 0.0  ;;  %v1909_v36 = vadd.f32 %v1907_v19, %v1505_v51  ;;  %v1922_v37 = vsel %vm1321_vm8, %v1920_v31, 0.0 }
 0x501   : > { %v1932_v38 = vrot.slane %v1931_v34, 4  ;;  %1923 = vadd.xlane.f32.xlu1 %v1922_v37  ;;  %v1921_v39 = vmul.f32 %v1907_v19, %v1905_v28  ;;  %v2142_v30 = vrot.slane %v2102_v20, 4  ;;  %v2135_v31 = vrot.slane %v2127_v24, %v4100_v17 }
 0x502   : > { %v1918_v40 = vsub.f32 %v1910_v33, %v1914_v32  ;;  %v1911_v41 = vadd.f32 %v1909_v36, %v4231_v44  ;;  %v1938_v42 = vsel %vm1321_vm8, %v1909_v36, 0.0 }
 0x503   : > { %v1933_v43 = vadd.f32 %v1932_v38, %v1931_v34  ;;  %v1939_v45 = vrot.slane %v1938_v42, 4  ;;  %v1925_v46 = vsel %vm1321_vm8, %v1921_v39, 0.0  ;;  %v2143_v34 = vrot.slane %v4304_v27, 4  ;;  %v3481_v39 = vld [vmem:[%s4047_s9 + $0x20] sm:$0xff] }
 0x504   : > { %3473 = vst.msk [vmem:[%s4064_s2 + $0x8] sm:$0xf] %vm1321_vm8, %v1918_v40  ;;  %v1919_v0 = vsub.f32 %v1911_v41, %v1915_v22  ;;  %v3485_v41 = vld [vmem:[%s4062_s27 + $0x10] sm:$0xf]  ;;  %v3486_v22 = vld [vmem:[%s4062_s27 + $0x14] sm:$0xf] }
 0x505   : > { %v1934_v47 = vrot.slane %v1933_v43, 2  ;;  %v1940_v12 = vadd.f32 %v1939_v45, %v1938_v42  ;;  %1926 = vadd.xlane.f32.xlu1 %v1925_v46  ;;  %v2150_v42 = vrot.slane %v3485_v41, 4  ;;  %v3501_v41 = vld [vmem:[%s4042_s25 + $0x30] sm:$0xff] }
 0x506   : > { %3474 = vst.msk [vmem:[%s4064_s2 + $0xc] sm:$0xf] %vm1321_vm8, %v1919_v0  ;;  %v1990_v49 = vcombine.low %v1918_v40, %v1919_v0  ;;  %v3482_v40 = vld [vmem:[%s4047_s9 + $0x28] sm:$0xff] }
 0x507   : > { %v1935_v44 = vadd.f32 %v1934_v47, %v1933_v43  ;;  %v1941_v50 = vrot.slane %v1940_v12, 2  ;;  %v2151_v43 = vrot.slane %v3486_v22, 4  ;;  %v2154_v45 = vsel %vm954_vm6, 0.0, %v2150_v42  ;;  %v3502_v22 = vld [vmem:[%s4042_s25 + $0x38] sm:$0xff]  ;;  %v3500_v42 = vld [vmem:[%s4037_s26 + $0x6] sm:$0x3] }
 0x508   : > { %3630 = vmatmul.mubr.msk.f32.vlgmr.msra.gmra.mxu0 %vm733_vm2, %v1990_v49 }
 0x509   : > { %v1936_v51 = vrot.slane %v1935_v44, 1  ;;  %v1942_v52 = vadd.f32 %v1941_v50, %v1940_v12  ;;  %3639 = vmatprep.mubr.msk.f32.mxu0 %vm3868_vm1, %v3867_v6  ;;  %3638 = vmatpush3.msra.mxu0 %v3480_v60  ;;  %v2155_v46 = vsel %vm954_vm6, 0.0, %v2151_v43 }
 0x50a   : > { %3647 = vmatprep.subr.mxu0 %v3867_v6 }
 0x50b   : > { %v1937_v53 = vadd.f32 %v1936_v51, %v1935_v44  ;;  %v1943_v55 = vrot.slane %v1942_v52, 1  ;;  %v2461_v51 = vrot.slane %v3478_v61, %v4111_v23 }
 0x50d   : > { %v1944_v56 = vadd.f32 %v1943_v55, %v1942_v52  ;;  %v1945_v57 = vmul.f32 0.25, %v1937_v53  ;;  %v2462_v52 = vcombine.high %v2461_v51, %v2461_v51  ;;  %v2469_v53 = vrot.slane %v2461_v51, %v4111_v23  ;;  %v3505_v51 = vld [vmem:[%s4057_s21 + $0x18] sm:$0xf] }
 0x50f   : > { %v1946_v58 = vmul.f32 0.25, %v1944_v56  ;;  %v2476_v55 = vrot.slane %v2462_v52, %v4111_v23  ;;  %v2480_v56 = vrot.slane %v2469_v53, %v4100_v17 }
 0x511   : > { %v1949_v48 = vsel %vm1349_vm9, %v1946_v58, %v1945_v57 }
 0x512   : > { %3475 = vst.msk [vmem:[%s4066_s8 + $0x2] sm:$0x3] %vm1352_vm10, %v1949_v48 }
 0x5c8   : > { %v2059_v62 = vpop.f32.mrf.mxu0 }
 0x5c9   : > { %v2060_v63 = vadd.f32 %v4026_v4, %v2059_v62 }
 0x5ca   : > { %v3631_v1 = vpop.f32.mrf.mxu0 }
 0x5cb   : > { %3754 = vtanh.f32 %v2060_v63 }
 0x5d8   : > { %v3755_v28 = vpop.eup %3754 }
 0x5d9   : > { %v2100_v29 = vadd.f32 %v3755_v28, %v2093_v18  ;;  %v2065_v19 = vcombine.high %v3755_v28, %v3755_v28 }
 0x5db   : > { %v2138_v32 = vadd.f32 %v2131_v25, %v2100_v29  ;;  %v2101_v33 = vadd.f32 %v2097_v26, %v2065_v19 }
 0x5dd   : > { %v2146_v36 = vsel %vm954_vm6, %v2138_v32, %v2142_v30  ;;  %v2139_v37 = vadd.f32 %v2135_v31, %v2101_v33 }
 0x5de   : > { %3635 = vmatmul.mubr.msk.f32.vlgmr.msra.gmra.mxu1 %vm733_vm2, %v2146_v36 }
 0x5df   : > { %v2147_v38 = vsel %vm954_vm6, %v2139_v37, %v2143_v34  ;;  %3644 = vmatprep.mubr.msk.f32.mxu1 %vm3868_vm1, %v3867_v6  ;;  %3643 = vmatpush3.xpose.msk.msra.mxu1 %vm1111_vm7, %v3481_v39 }
 0x5e0   : > { %3640 = vmatmul.mubr.msk.f32.vlgmr.msra.gmra.mxu0 %vm733_vm2, %v2147_v38  ;;  %3652 = vmatprep.subr.mxu1 %v3867_v6 }
 0x5e1   : > { %3649 = vmatprep.mubr.msk.f32.mxu0 %vm3868_vm1, %v3867_v6  ;;  %3648 = vmatpush3.xpose.msk.msra.mxu0 %vm1111_vm7, %v3482_v40 }
 0x5e2   : > { %3657 = vmatprep.subr.mxu0 %v3867_v6 }
 0x69e   : > { %v2225_v0 = vpop.f32.mrf.mxu1 }
 0x69f   : > { %v2226_v47 = vadd.f32 %v2225_v0, %v2154_v45  ;;  %v2687_v0 = vmul.f32 %v3500_v42, %v4105_v21 }
 0x6a0   : > { %v3636_v12 = vpop.f32.mrf.mxu1  ;;  %v2298_v49 = vpop.f32.mrf.mxu0 }
 0x6a1   : > { %v2299_v44 = vadd.f32 %v2298_v49, %v2155_v46  ;;  %3645 = vmatmul.mubr.msk.f32.vlgmr.msra.gmra.mxu1 %vm1111_vm7, %v2226_v47  ;;  %v3510_v47 = vld.sshfl [vmem:[%s4032_s29 + $0x6] sm:$0x11 pattern:$0x75316420]  ;;  %v2695_v12 = vrot.slane %v2687_v0, %v4111_v23 }
 0x6a2   : > { %v3641_v50 = vpop.f32.mrf.mxu0  ;;  %3653 = vmatpush3.msra.mxu1 %v4021_v3  ;;  %3654 = vmatprep.mubr.msk.f32.mxu1 %vm3868_vm1, %v3867_v6  ;;  %v2484_v3 = vrot.slane %v2476_v55, %v4100_v17  ;;  %v2658_v49 = vcombine.high %v3510_v47, %v3510_v47  ;;  %v3506_v55 = vld [vmem:[%s4057_s21 + $0x1c] sm:$0xf] }
 0x6a3   : > { %3650 = vmatmul.mubr.msk.f32.vlgmr.msra.gmra.mxu0 %vm1111_vm7, %v2299_v44  ;;  %3662 = vmatprep.subr.mxu1 %v3867_v6  ;;  %v2665_v44 = vrot.slane %v3510_v47, %v4111_v23  ;;  %v2696_v50 = vcombine.high %v2695_v12, %v2695_v12  ;;  %v2703_v52 = vrot.slane %v2695_v12, %v4111_v23 }
 0x6a4   : > { %3659 = vmatprep.mubr.msk.f32.mxu0 %vm3868_vm1, %v3867_v6  ;;  %3658 = vmatpush3.msra.mxu0 %v3501_v41  ;;  %v2672_v53 = vrot.slane %v2658_v49, %v4111_v23 }
 0x6a5   : > { %3667 = vmatprep.subr.mxu0 %v3867_v6 }
 0x761   : > { %v2374_v57 = vpop.f32.mrf.mxu1 }
 0x762   : > { %v2487_v58 = vsub.f32 %v2480_v56, %v2374_v57  ;;  %v2497_v2 = vcombine.high %v2374_v57, %v2374_v57  ;;  %v2676_v56 = vrot.slane %v2665_v44, %v4100_v17  ;;  %v2714_v57 = vrot.slane %v2703_v52, %v4100_v17 }
 0x763   : > { %v3646_v48 = vpop.f32.mrf.mxu1  ;;  %v2450_v59 = vpop.f32.mrf.mxu0 }
 0x764   : > { %v2489_v60 = vmul.f32 %v2487_v58, %v4105_v21  ;;  %v2488_v62 = vsub.f32 %v2484_v3, %v2450_v59  ;;  %v2498_v18 = vcombine.high %v2450_v59, %v2450_v59  ;;  %v2710_v3 = vrot.slane %v2696_v50, %v4111_v23 }
 0x765   : > { %v3651_v63 = vpop.f32.mrf.mxu0  ;;  %v4378_v48 = vmul.f32 %v3506_v55, %v4219_v35 }
 0x766   : > { %v2491_v54 = vadd.f32 %v2489_v60, %v2100_v29  ;;  %v2490_v61 = vmul.f32 %v2488_v62, %v4105_v21  ;;  %v2503_v1 = vmul.f32 %v2489_v60, %v2487_v58  ;;  %v2680_v58 = vrot.slane %v2672_v53, %v4100_v17 }
 0x768   : > { %v2493_v5 = vadd.f32 %v2491_v54, %v2102_v20  ;;  %v2514_v7 = vsel %vm1321_vm8, %v2491_v54, 0.0  ;;  %v2492_v8 = vadd.f32 %v2490_v61, %v2101_v33  ;;  %v2505_v9 = vsel %vm1321_vm8, %v2503_v1, 0.0 }
 0x769   : > { %v2515_v10 = vrot.slane %v2514_v7, 4  ;;  %2506 = vadd.xlane.f32.xlu0 %v2505_v9  ;;  %v2504_v11 = vmul.f32 %v2490_v61, %v2488_v62  ;;  %v2718_v54 = vrot.slane %v2710_v3, %v4100_v17  ;;  %v3504_v9 = vld [vmem:[%s4047_s9 + $0x38] sm:$0xff] }
 0x76a   : > { %v2501_v15 = vsub.f32 %v2493_v5, %v2497_v2  ;;  %v2494_v16 = vadd.f32 %v2492_v8, %v4304_v27  ;;  %v2521_v24 = vsel %vm1321_vm8, %v2492_v8, 0.0  ;;  %v2726_v2 = vrot.slane %v4378_v48, 4  ;;  %v3503_v8 = vld [vmem:[%s4047_s9 + $0x30] sm:$0xff]  ;;  %s3170_s9 = sshll.u32 %s4064_s2, 4  ;;  %s4456_s9 = int_to_ptr.vmem [resolvable:$true] %s3170_s9 }
 0x76b   : > { %v2516_v25 = vadd.f32 %v2515_v10, %v2514_v7  ;;  %v2522_v26 = vrot.slane %v2521_v24, 4  ;;  %v2508_v28 = vsel %vm1321_vm8, %v2504_v11, 0.0  ;;  %v3507_v10 = vld [vmem:[%s4062_s27 + $0x18] sm:$0xf]  ;;  %v3508_v11 = vld [vmem:[%s4062_s27 + $0x1c] sm:$0xf]  ;;  %p3765_p3 = scmp.lt.s32.totalorder %s4456_s9, %s3763_s14 }
 0x76c   : > { %3495 = vst.msk [vmem:[%s4064_s2 + $0x10] sm:$0xf] %vm1321_vm8, %v2501_v15  ;;  %v2502_v20 = vsub.f32 %v2494_v16, %v2498_v18  ;;  %2509 = vadd.xlane.f32.xlu1 %v2508_v28  ;;  %v2734_v16 = vrot.slane %v3508_v11, 4  ;;  %s3758_s17 = scalar_lea.vmem %s4456_s9, 512 }
 0x76d   : > { %v2517_v29 = vrot.slane %v2516_v25, 2  ;;  %v2523_v30 = vadd.f32 %v2522_v26, %v2521_v24  ;;  %p3759_p0 = scmp.ne.s32.totalorder %s4456_s9, %s3758_s17 }
 0x76e   : > { %3496 = vst.msk [vmem:[%s4064_s2 + $0x14] sm:$0xf] %vm1321_vm8, %v2502_v20  ;;  %v2573_v19 = vcombine.low %v2501_v15, %v2502_v20  ;;  %v2733_v15 = vrot.slane %v3507_v10, 4 }
 0x76f   : > { %v2518_v27 = vadd.f32 %v2517_v29, %v2516_v25  ;;  %v2524_v31 = vrot.slane %v2523_v30, 2  ;;  %v2738_v25 = vsel %vm954_vm6, 0.0, %v2734_v16  ;;  %p3760_p1 = pnand %p3759_p0, %p3986_p4 }
 0x770   : > { %3655 = vmatmul.mubr.msk.f32.vlgmr.msra.gmra.mxu1 %vm733_vm2, %v2573_v19  ;;  %v2737_v18 = vsel %vm954_vm6, 0.0, %v2733_v15 }
 0x771   : > { %v2519_v32 = vrot.slane %v2518_v27, 1  ;;  %v2525_v33 = vadd.f32 %v2524_v31, %v2523_v30  ;;  %3664 = vmatprep.mubr.msk.f32.mxu1 %vm3868_vm1, %v3867_v6  ;;  %3663 = vmatpush3.msra.mxu1 %v3502_v22  ;;  %v3044_v30 = vrot.slane %v3500_v42, %v4111_v23  ;;  %p3761_p2 = pneg %p3760_p1 }
 0x772   : > { %3672 = vmatprep.subr.mxu1 %v3867_v6 }
 0x773   : > { %v2520_v34 = vadd.f32 %v2519_v32, %v2518_v27  ;;  %v2526_v36 = vrot.slane %v2525_v33, 1  ;;  %v3045_v19 = vcombine.high %v3044_v30, %v3044_v30  ;;  %v1324_v27 = vpop.xlane.xlu0 %1323  ;;  %v3052_v31 = vrot.slane %v3044_v30, %v4111_v23  ;;  %v1924_v32 = vpop.xlane.xlu1 %1923 }
 0x775   : > { %v2527_v37 = vadd.f32 %v2526_v36, %v2525_v33  ;;  %v2528_v38 = vmul.f32 0.25, %v2520_v34  ;;  %v3059_v33 = vrot.slane %v3045_v19, %v4111_v23  ;;  %v1357_v34 = vand.u32 127, %v814_v13 }
 0x776   : > { %v3063_v36 = vrot.slane %v3052_v31, %v4100_v17 }
 0x777   : > { %v2529_v39 = vmul.f32 0.25, %v2527_v37  ;;  %v1327_v37 = vpop.xlane.xlu0 %1326  ;;  %v1927_v41 = vpop.xlane.xlu1 %1926 }
 0x779   : > { %v2532_v40 = vsel %vm1349_vm9, %v2529_v39, %v2528_v38  ;;  %v3067_v38 = vrot.slane %v3059_v33, %v4100_v17  ;;  %v4408_v39 = vsub.s32 %v1357_v34, %v4097_v14 }
 0x77a   : > { %3497 = vst.msk [vmem:[%s4066_s8 + $0x4] sm:$0x3] %vm1352_vm10, %v2532_v40 }
 0x77b   : > { %v1365_v42 = vrot.slane %v1327_v37, %v4408_v39  ;;  %v1361_v13 = vrot.slane %v1324_v27, %v4408_v39  ;;  %v1962_v14 = vrot.slane %v1927_v41, %v4408_v39  ;;  %v1958_v3 = vrot.slane %v1924_v32, %v4408_v39 }
 0x77d   : > { %v1366_v50 = vsel %vm1349_vm9, %v1365_v42, %v1361_v13 }
 0x7f5   : > { %v2510_v47 = vpop.xlane.xlu1 %2509 }
 0x830   : > { %v2642_v43 = vpop.f32.mrf.mxu1 }
 0x831   : > { %v2643_v45 = vadd.f32 %v4026_v4, %v2642_v43  ;;  %v4372_v4 = vmul.f32 %v3505_v51, %v4219_v35  ;;  %v2507_v51 = vpop.xlane.xlu0 %2506 }
 0x832   : > { %v3656_v46 = vpop.f32.mrf.mxu1 }
 0x833   : > { %3756 = vtanh.f32 %v2643_v45  ;;  %v2725_v62 = vrot.slane %v4372_v4, 4 }
 0x840   : > { %v3757_v59 = vpop.eup %3756 }
 0x841   : > { %v2683_v60 = vadd.f32 %v3757_v59, %v2676_v56  ;;  %v2648_v63 = vcombine.high %v3757_v59, %v3757_v59 }
 0x843   : > { %v2721_v61 = vadd.f32 %v2714_v57, %v2683_v60  ;;  %v2684_v1 = vadd.f32 %v2680_v58, %v2648_v63  ;;  %v2541_v63 = vrot.slane %v2507_v51, %v4408_v39 }
 0x845   : > { %v2729_v5 = vsel %vm954_vm6, %v2721_v61, %v2725_v62  ;;  %v2722_v7 = vadd.f32 %v2718_v54, %v2684_v1 }
 0x846   : > { %3660 = vmatmul.mubr.msk.f32.vlgmr.msra.gmra.mxu0 %vm733_vm2, %v2729_v5  ;;  %v1369_v5 = vsel %vm1368_vm13, %v1366_v50, 0.0 }
 0x847   : > { %v2730_v35 = vsel %vm954_vm6, %v2722_v7, %v2726_v2  ;;  %3669 = vmatprep.mubr.msk.f32.mxu0 %vm3868_vm1, %v3867_v6  ;;  %3668 = vmatpush3.xpose.msk.msra.mxu0 %vm1111_vm7, %v3503_v8 }
 0x848   : > { %3665 = vmatmul.mubr.msk.f32.vlgmr.msra.gmra.mxu1 %vm733_vm2, %v2730_v35 }
 0x849   : > { %3674 = vmatprep.mubr.msk.f32.mxu1 %vm3868_vm1, %v3867_v6  ;;  %3673 = vmatpush3.xpose.msk.msra.mxu1 %vm1111_vm7, %v3504_v9 }
 0x906   : > { %v2808_v24 = vpop.f32.mrf.mxu0 }
 0x907   : > { %v2809_v26 = vadd.f32 %v2808_v24, %v2737_v18 }
 0x908   : > { %v3661_v28 = vpop.f32.mrf.mxu0  ;;  %v2881_v20 = vpop.f32.mrf.mxu1 }
 0x909   : > { %v2882_v29 = vadd.f32 %v2881_v20, %v2738_v25  ;;  %3670 = vmatmul.mubr.msk.f32.vlgmr.msra.gmra.mxu0 %vm1111_vm7, %v2809_v26 }
 0x90a   : > { %v3666_v6 = vpop.f32.mrf.mxu1 }
 0x90b   : > { %3675 = vmatmul.mubr.msk.f32.vlgmr.msra.gmra.mxu1 %vm1111_vm7, %v2882_v29 }
 0x9c9   : > { %v2957_v40 = vpop.f32.mrf.mxu0 }
 0x9ca   : > { %v3070_v22 = vsub.f32 %v3063_v36, %v2957_v40  ;;  %v3080_v44 = vcombine.high %v2957_v40, %v2957_v40 }
 0x9cb   : > { %v3671_v43 = vpop.f32.mrf.mxu0  ;;  %v3033_v45 = vpop.f32.mrf.mxu1 }
 0x9cc   : > { %v3072_v0 = vmul.f32 %v3070_v22, %v4105_v21  ;;  %v3071_v23 = vsub.f32 %v3067_v38, %v3033_v45  ;;  %v3081_v62 = vcombine.high %v3033_v45, %v3033_v45 }
 0x9cd   : > { %v3676_v46 = vpop.f32.mrf.mxu1 }
 0x9ce   : > { %v3074_v12 = vadd.f32 %v3072_v0, %v2683_v60  ;;  %v3073_v17 = vmul.f32 %v3071_v23, %v4105_v21  ;;  %v3086_v49 = vmul.f32 %v3072_v0, %v3070_v22  ;;  %v2545_v21 = vrot.slane %v2510_v47, %v4408_v39 }
 0x9d0   : > { %v3076_v52 = vadd.f32 %v3074_v12, %v4372_v4  ;;  %v3097_v53 = vsel %vm1321_vm8, %v3074_v12, 0.0  ;;  %v3075_v55 = vadd.f32 %v3073_v17, %v2684_v1  ;;  %v3088_v56 = vsel %vm1321_vm8, %v3086_v49, 0.0 }
 0x9d1   : > { %v3098_v57 = vrot.slane %v3097_v53, 4  ;;  %3089 = vadd.xlane.f32.xlu0 %v3088_v56  ;;  %v3087_v58 = vmul.f32 %v3073_v17, %v3071_v23  ;;  %v2546_v8 = vsel %vm1349_vm9, %v2545_v21, %v2541_v63 }
 0x9d2   : > { %v3084_v59 = vsub.f32 %v3076_v52, %v3080_v44  ;;  %v3077_v60 = vadd.f32 %v3075_v55, %v4378_v48  ;;  %v3104_v4 = vsel %vm1321_vm8, %v3075_v55, 0.0  ;;  %v1963_v48 = vsel %vm1349_vm9, %v1962_v14, %v1958_v3 }
 0x9d3   : > { %v3099_v54 = vadd.f32 %v3098_v57, %v3097_v53  ;;  %v3105_v61 = vrot.slane %v3104_v4, 4  ;;  %v3091_v1 = vsel %vm1321_vm8, %v3087_v58, 0.0  ;;  %v1965_v11 = vsel %vm1368_vm13, %v1963_v48, 0.0 }
 0x9d4   : > { %3517 = vst.msk [vmem:[%s4064_s2 + $0x18] sm:$0xf] %vm1321_vm8, %v3084_v59  ;;  %3138 = vst.msk [vmem:[#allocation2] sm:$0xf] %vm1321_vm8, %v3084_v59  ;;  %v3085_v2 = vsub.f32 %v3077_v60, %v3081_v62  ;;  %3092 = vadd.xlane.f32.xlu1 %v3091_v1  ;;  %v2548_v15 = vsel %vm1368_vm13, %v2546_v8, 0.0 }
 0x9d5   : > { %v3100_v7 = vrot.slane %v3099_v54, 2  ;;  %v3106_v35 = vadd.f32 %v3105_v61, %v3104_v4  ;;  %1370 = vadd.xlane.f32.xlu0 %v1369_v5 }
 0x9d6   : > { %3518 = vst.msk [vmem:[%s4064_s2 + $0x1c] sm:$0xf] %vm1321_vm8, %v3085_v2  ;;  %3139 = vst.msk [vmem:[#allocation2 + $0x4] sm:$0xf] %vm1321_vm8, %v3085_v2  ;;  %s3764_s2 = scalar_lea.vmem %s3763_s14, 1024 }
 0x9d7   : > { %v3101_v9 = vadd.f32 %v3100_v7, %v3099_v54  ;;  %v3107_v10 = vrot.slane %v3106_v35, 2  ;;  %p3766_p5 = scmp.lt.s32.totalorder %s3764_s2, %s3758_s17 }
 0x9d8   : > { %1966 = vadd.xlane.f32.xlu1 %v1965_v11 }
 0x9d9   : > { %v3102_v16 = vrot.slane %v3101_v9, 1  ;;  %v3108_v18 = vadd.f32 %v3107_v10, %v3106_v35  ;;  %2549 = vadd.xlane.f32.xlu0 %v2548_v15  ;;  %p3767_p6 = por %p3766_p5, %p3765_p3 }
 0x9db   : > { %v3103_v24 = vadd.f32 %v3102_v16, %v3101_v9  ;;  %v3109_v25 = vrot.slane %v3108_v18, 1  ;;  %p3768_p7 = pnand %p3767_p6, %p3761_p2 }
 0x9dd   : > { %v3110_v26 = vadd.f32 %v3109_v25, %v3108_v18  ;;  %v3111_v28 = vmul.f32 0.25, %v3103_v24 }
 0x9df   : > { %v3112_v20 = vmul.f32 0.25, %v3110_v26 }
 0x9e1   : > { %v3115_v29 = vsel %vm1349_vm9, %v3112_v20, %v3111_v28 }
 0x9e2   : > { %3519 = vst.msk [vmem:[%s4066_s8 + $0x6] sm:$0x3] %vm1352_vm10, %v3115_v29 }
 0xa5a   : > { %v3090_v6 = vpop.xlane.xlu0 %3089 }
 0xa5b   : > { %v3124_v19 = vrot.slane %v3090_v6, %v4408_v39 }
 0xa5d   : > { %v3093_v30 = vpop.xlane.xlu1 %3092 }
 0xa5e   : > { %v3128_v27 = vrot.slane %v3093_v30, %v4408_v39  ;;  %v1371_v31 = vpop.xlane.xlu0 %1370 }
 0xa5f   : > { %v1372_v32 = vmul.f32 0.25, %v1371_v31 }
 0xa60   : > { %v3129_v33 = vsel %vm1349_vm9, %v3128_v27, %v3124_v19 }
 0xa61   : > { %v1373_v34 = vmul.f32 0.5, %v1372_v32  ;;  %v1967_v36 = vpop.xlane.xlu1 %1966  ;;  %v3131_v37 = vsel %vm1368_vm13, %v3129_v33, 0.0 }
 0xa62   : > { %v1968_v38 = vmul.f32 0.25, %v1967_v36  ;;  %3132 = vadd.xlane.f32.xlu1 %v3131_v37  ;;  %v2550_v40 = vpop.xlane.xlu0 %2549 }
 0xa63   : > { %1375 = vst.msk [vmem:[%s4052_s19] sm:$0x3] %vm1374_vm14, %v1373_v34  ;;  %v2551_v39 = vmul.f32 0.25, %v2550_v40 }
 0xa64   : > { %v1969_v41 = vmul.f32 0.5, %v1968_v38 }
 0xa65   : > { %v2552_v22 = vmul.f32 0.5, %v2551_v39 }
 0xa66   : > { %3476 = vst.msk [vmem:[%s4052_s19 + $0x2] sm:$0x3] %vm1374_vm14, %v1969_v41 }
 0xa67   : > { %3498 = vst.msk [vmem:[%s4052_s19 + $0x4] sm:$0x3] %vm1374_vm14, %v2552_v22 }
 0xa68   : > { %3771 = shalt.err (!%p3768_p7)
}
 0xa69   : > { %s3772_s29 = scalar_lea.hbm %s4454_s16, 512  ;;  %s3776_s20 = scalar_lea.hbm %s4548_s11, 1024 }
 0xa6a   : > { %p3773_p9 = scmp.ne.s32.totalorder %s4454_s16, %s3772_s29  ;;  %p3777_p12 = scmp.lt.s32.totalorder %s4454_s16, %s4548_s11 }
 0xa6b   : > { %p3778_p13 = scmp.lt.s32.totalorder %s3776_s20, %s3772_s29 }
 0xa6c   : > { %p3774_p10 = pnand %p3773_p9, %p3986_p4 }
 0xa6d   : > { %p3779_p0 = por %p3778_p13, %p3777_p12 }
 0xa6e   : > { %p3775_p11 = pneg %p3774_p10 }
 0xa70   : > { %p3780_p1 = pnand %p3779_p0, %p3775_p11 }
 0xa72   : > { %3783 = shalt.err (!%p3780_p1)
}
 0xa73   : > { %s3871_s21 = smov 64   ;;  %s3872_s7 = smov 4  }
 0xa74   : > { %3677 = dma.vmem_to_hbm [thread:$0]  (%p3986_p4), %s4456_s9, 512, %s4454_s16, %s3141_s23, %s3871_s21, %s3871_s21, %s3872_s7  }
 0xa75   : > { %s3536_s27 = sshll.u32 %s3856_s28, 7  ;;  %s3187_s0 = sshll.u32 %s4066_s8, 4  ;;  %s4488_s0 = int_to_ptr.vmem [resolvable:$true] %s3187_s0 }
 0xa76   : > { %s4486_s30 = scalar_lea.hbm %s4549_s12, %s3536_s27  ;;  %s3146_s17 = scalar_lea.sflag [#allocation6], %s4002_s22 }
 0xa77   : > { %s3784_s24 = scalar_lea.vmem %s4488_s0, 128  ;;  %s3873_s14 = smov [#allocation5]  }
 0xa78   : > { %p3785_p2 = scmp.ne.s32.totalorder %s4488_s0, %s3784_s24  ;;  %s3788_s9 = sshll.u32 %s3873_s14, 4  ;;  %s3789_s9 = int_to_ptr.vmem [resolvable:$false] %s3788_s9 }
 0xa79   : > { %s3790_s28 = scalar_lea.vmem %s3789_s9, 256  ;;  %p3791_p6 = scmp.lt.s32.totalorder %s4488_s0, %s3789_s9 }
 0xa7a   : > { %p3786_p3 = pnand %p3785_p2, %p3986_p4  ;;  %p3792_p7 = scmp.lt.s32.totalorder %s3790_s28, %s3784_s24 }
 0xa7c   : > { %p3787_p5 = pneg %p3786_p3  ;;  %p3793_p9 = por %p3792_p7, %p3791_p6 }
 0xa7e   : > { %p3794_p10 = pnand %p3793_p9, %p3787_p5 }
 0xa80   : > { %3797 = shalt.err (!%p3794_p10)
}
 0xa81   : > { %s3798_s8 = scalar_lea.hbm %s4486_s30, 128  ;;  %s3802_s2 = scalar_lea.hbm %s4549_s12, 256 }
 0xa82   : > { %p3799_p11 = scmp.ne.s32.totalorder %s4486_s30, %s3798_s8  ;;  %p3803_p0 = scmp.lt.s32.totalorder %s4486_s30, %s4549_s12 }
 0xa83   : > { %p3804_p1 = scmp.lt.s32.totalorder %s3802_s2, %s3798_s8 }
 0xa84   : > { %p3800_p12 = pnand %p3799_p11, %p3986_p4 }
 0xa85   : > { %p3805_p2 = por %p3804_p1, %p3803_p0 }
 0xa86   : > { %p3801_p13 = pneg %p3800_p12 }
 0xa88   : > { %p3806_p3 = pnand %p3805_p2, %p3801_p13 }
 0xa8a   : > { %3809 = shalt.err (!%p3806_p3)
}
 0xa8b   : > { %s3874_s25 = smov 32   ;;  %s3875_s20 = smov 2  }
 0xa8c   : > { %3678 = dma.vmem_to_hbm [thread:$0]  (%p3986_p4), %s4488_s0, 128, %s4486_s30, %s3146_s17, %s3874_s25, %s3874_s25, %s3875_s20  }
 0xaeb   : > { %v3133_v42 = vpop.xlane.xlu1 %3132 }
 0xaec   : > { %v3134_v43 = vmul.f32 0.25, %v3133_v42 }
 0xaee   : > { %v3135_v45 = vmul.f32 0.5, %v3134_v43 }
 0xaf0   : > { %3520 = vst.msk [vmem:[%s4052_s19 + $0x6] sm:$0x3] %vm1374_vm14, %v3135_v45 }
 0xaf1 PF: > { %s4587_s15 = sld [smem:[#allocation13_spill]] }
 0xaf2   : > { %s4588_s6 = sld [smem:[#allocation9_spill]] }
 0xaf7   : > { %p3688_p5 = scmp.ge.s32.totalorder %s4587_s15, 2 }
 0xaf8   : > { %s3206_s7 = sand.u32 1, %s4588_s6  }
 0xaf9   : > { %p3682_p6 = pnand %p3688_p5, %p3993_p8  ;;  %s3207_s27 = scalar_lea.sflag [#allocation4], %s3206_s7 }
 0xafb   : > { %p3683_p7 = pneg %p3682_p6 }
 0xafd   : > { %3835 = dma.done.wait (%p3683_p7), %s3207_s27, 512  }
 0xafe   : > { %3837 = vsyncadd (%p3683_p7), %s3207_s27, 4294966784  ;;  %s3216_s18 = scalar_lea.sflag [#allocation6], %s3206_s7 }
 0xaff   : > { %3839 = dma.done.wait (%p3683_p7), %s3216_s18, 128  }
 0xb00   : > { %3841 = vsyncadd (%p3683_p7), %s3216_s18, 4294967168  ;;  %s30_s30 = sadd.s32 1, %s4587_s15   ;;  %s4590_s25 = sld [smem:[#allocation10_spill]] }
 0xb01   : > { %p27_p4 = scmp.ge.s32.totalorder %s30_s30, 4   ;;  %s4591_s26 = sld [smem:[#allocation11_spill]] }
 0xb02   : > { %s4592_s27 = sld [smem:[#allocation16_spill]] }
 0xb03   : > { %s4593_s28 = sld [smem:[#allocation12_spill]]  ;;  %29 = sbr.rel (!%p27_p4) target bundleno = 15 (0xf), region = 174 }
 0xb04   : > { %s4594_s29 = sld [smem:[#allocation14_spill]] }
 0xb08   :  { %3232 = vsyncpa [#allocation4], 1 }
 0xb09   :  { %3234 = vsyncpa [#allocation4 + $0x1], 1 }
 0xb0a   :  { %3235 = vsyncpa [#allocation6], 1 }
 0xb0b   :  { %3237 = vsyncpa [#allocation6 + $0x1], 1 }

</bundles_post_ra>
